<compile_context>
chip_gen: v5e
topology: v5e:2x2
jax: 0.10.0
libtpu: 0.0.40
codegen_flags: <defaults>
</compile_context>

<pallas_src>
import math

import jax
import jax.numpy as jnp
from jax.experimental import pallas as pl
from jax.experimental.pallas import tpu as pltpu

# ----------------------------- model config ---------------------------------
NTOKEN = 100          # vocab size (ntoken)
D_MODEL = 32
NHEAD = 4
HEAD_DIM = D_MODEL // NHEAD
D_HID = 64
NLAYERS = 2
NLAYERS_CLS = 3
N_CLS = 1
PAD_ID = 0            # vocab['<pad>']
BN_EPS = 6.1e-5
LN_EPS = 1e-5
MAX_VALUE = 512.0     # ContinuousValueEncoder clamp
NEG_INF = -1e9        # additive key-padding mask value

# ----------------------------- packed-slab layout ----------------------------
# All weight matrices live in one (MAT_ROWS, SLAB_W) f32 slab; all bias / LN / folded-BN
# vectors live in one (VEC_ROWS, SLAB_W) slab.  Static sublane offsets below are shared
# by pack_params() and the kernel.
SLAB_W = 128

M_VW2 = 0                                        # (d, d)   ContinuousValueEncoder linear2
M_LAYER0 = 32
M_WQKV, M_WO, M_W1, M_W2 = 0, 32, 64, 96          # offsets within one layer block
M_LAYER_STRIDE = 160                              # 32+32+32+64 rows per layer
M_DEC_W1 = M_LAYER0 + NLAYERS * M_LAYER_STRIDE    # 352
M_DEC_W2 = M_DEC_W1 + D_MODEL                     # 384
M_CLS_W1 = M_DEC_W2 + D_MODEL                     # 416
M_CLS_W2 = M_CLS_W1 + D_MODEL                     # 448
MAT_ROWS = M_CLS_W2 + D_MODEL                     # 480  (multiple of 8)

R_GLN_G, R_GLN_B = 0, 1
R_VW1, R_VB1, R_VB2 = 2, 3, 4
R_VLN_G, R_VLN_B = 5, 6
R_BN_SCALE, R_BN_SHIFT = 7, 8
R_LAYER0 = 16                                     # per-layer vector block (8 rows), aligned
R_LAYER_STRIDE = 8
#   +0 bqkv(3d) +1 bo +2 ln1_g +3 ln1_b +4 b1(d_hid) +5 b2 +6 ln2_g +7 ln2_b
R_DEC_B1 = R_LAYER0 + NLAYERS * R_LAYER_STRIDE    # 32
R_DEC_B2, R_DEC_W3, R_DEC_B3 = R_DEC_B1 + 1, R_DEC_B1 + 2, R_DEC_B1 + 3
R_CLS_B1, R_CLS_G1, R_CLS_BB1 = 36, 37, 38
R_CLS_B2, R_CLS_G2, R_CLS_BB2 = 39, 40, 41
R_CLS_WO, R_CLS_BO = 42, 43
VEC_ROWS = 48                                     # padded to a multiple of 8


def _layernorm(x, g, b, eps=LN_EPS):
    mu = jnp.mean(x, axis=-1, keepdims=True)
    var = jnp.mean((x - mu) ** 2, axis=-1, keepdims=True)
    return (x - mu) * jax.lax.rsqrt(var + eps) * g + b


# ----------------------------- fused forward kernel --------------------------
def fused_forward_kernel(gene_ref, vals_ref, mask_ref, wmat_ref, wvec_ref,
                         mlm_ref, cc_ref):
    f32 = jnp.float32
    S = gene_ref.shape[1]

    def vec(row, width=D_MODEL):
        return wvec_ref[row:row + 1, 0:width]                 # (1, width)

    def mat(row, nrows, ncols):
        return wmat_ref[row:row + nrows, 0:ncols]             # (nrows, ncols)

    # ---- GeneEncoder LN + ContinuousValueEncoder + folded eval-mode BatchNorm ----------
    gene = _layernorm(gene_ref[0], vec(R_GLN_G), vec(R_GLN_B))            # (S, d)
    v = jnp.minimum(vals_ref[0], MAX_VALUE)                                # (S, 1)
    hv = jnp.maximum(v * vec(R_VW1) + vec(R_VB1), 0.0)                     # Linear(1,d)+ReLU
    hv = jnp.dot(hv, mat(M_VW2, D_MODEL, D_MODEL),
                 preferred_element_type=f32) + vec(R_VB2)                  # Linear(d,d)
    vemb = _layernorm(hv, vec(R_VLN_G), vec(R_VLN_B))
    x = gene + vemb                                                        # 'continuous': add
    x = x * vec(R_BN_SCALE) + vec(R_BN_SHIFT)                              # folded BN (eval)

    # additive key-padding mask: broadcast ONCE, reused across all heads / layers
    am = jnp.broadcast_to(mask_ref[0], (S, S))                             # (S, S)

    # ---- transformer encoder layers (post-norm) -----------------------------------------
    for l in range(NLAYERS):                                               # static, NLAYERS=2
        mb = M_LAYER0 + l * M_LAYER_STRIDE
        vb = R_LAYER0 + l * R_LAYER_STRIDE
        wqkv = mat(mb + M_WQKV, D_MODEL, 3 * D_MODEL)
        wo = mat(mb + M_WO, D_MODEL, D_MODEL)
        w1 = mat(mb + M_W1, D_MODEL, D_HID)
        w2 = mat(mb + M_W2, D_HID, D_MODEL)
        bqkv = vec(vb + 0, 3 * D_MODEL)
        bo = vec(vb + 1)
        ln1_g, ln1_b = vec(vb + 2), vec(vb + 3)
        b1 = vec(vb + 4, D_HID)
        b2 = vec(vb + 5)
        ln2_g, ln2_b = vec(vb + 6), vec(vb + 7)

        # fused QKV: one 2-D MXU matmul, 1/sqrt(head_dim) already folded into the Q columns
        qkv = jnp.dot(x, wqkv, preferred_element_type=f32) + bqkv          # (S, 3d)

        # per-head attention with 2-D matmuls; head outputs concatenated once so the output
        # projection is a single K=d matmul instead of NHEAD separate K=head_dim drains.
        # TODO(synk): for realistic scGPT lengths (S ~ 1-2k) tile flash-style over the key
        #             axis (online softmax, q-tile grid axis) and re-budget VMEM for v7x
        #             (64 MiB total / 32 MiB scoped) and v5e (16 MiB scoped).
        heads = []
        for hh in range(NHEAD):
            lo = hh * HEAD_DIM
            q_h = qkv[:, lo:lo + HEAD_DIM]                                 # (S, hd), pre-scaled
            k_h = qkv[:, D_MODEL + lo:D_MODEL + lo + HEAD_DIM]
            v_h = qkv[:, 2 * D_MODEL + lo:2 * D_MODEL + lo + HEAD_DIM]
            s = jnp.einsum("qe,ke->qk", q_h, k_h, preferred_element_type=f32) + am
            s = s - jnp.max(s, axis=-1, keepdims=True)
            p = jnp.exp(s)
            p = p * pl.reciprocal(jnp.sum(p, axis=-1, keepdims=True), approx=True)
            heads.append(jnp.dot(p, v_h, preferred_element_type=f32))      # (S, hd)
        attn = jnp.dot(jnp.concatenate(heads, axis=-1), wo,
                       preferred_element_type=f32)                         # (S, d), K = d

        # post-norm: x = LN(x + SA(x)); x = LN(x + FFN(x)); dropout = identity
        x1 = _layernorm(x + attn + bo, ln1_g, ln1_b)
        ff = jnp.maximum(jnp.dot(x1, w1, preferred_element_type=f32) + b1, 0.0)
        ff = jnp.dot(ff, w2, preferred_element_type=f32) + b2
        x = _layernorm(x1 + ff, ln2_g, ln2_b)

    # ---- ExprDecoder: Linear+LeakyReLU x2 -> Linear(d,1), emitted token-axis-last --------
    hdec = jnp.dot(x, mat(M_DEC_W1, D_MODEL, D_MODEL),
                   preferred_element_type=f32) + vec(R_DEC_B1)
    hdec = jnp.where(hdec >= 0, hdec, 0.01 * hdec)                         # LeakyReLU(0.01)
    hdec = jnp.dot(hdec, mat(M_DEC_W2, D_MODEL, D_MODEL),
                   preferred_element_type=f32) + vec(R_DEC_B2)
    hdec = jnp.where(hdec >= 0, hdec, 0.01 * hdec)
    mlm = jnp.einsum("nd,sd->ns", vec(R_DEC_W3), hdec,
                     preferred_element_type=f32)                           # (1, S)
    mlm_ref[0] = mlm + vec(R_DEC_B3, 1)

    # ---- cell embedding ('cls' token) + ClsDecoder, packed into one output slab ----------
    cell = x[0:1, :]                                                       # (1, d)
    hc = jnp.maximum(jnp.dot(cell, mat(M_CLS_W1, D_MODEL, D_MODEL),
                             preferred_element_type=f32) + vec(R_CLS_B1), 0.0)
    hc = _layernorm(hc, vec(R_CLS_G1), vec(R_CLS_BB1))
    hc = jnp.maximum(jnp.dot(hc, mat(M_CLS_W2, D_MODEL, D_MODEL),
                             preferred_element_type=f32) + vec(R_CLS_B2), 0.0)
    hc = _layernorm(hc, vec(R_CLS_G2), vec(R_CLS_BB2))
    cls_logit = jnp.sum(hc * vec(R_CLS_WO), axis=-1, keepdims=True) + vec(R_CLS_BO, 1)  # (1,1)
    cc_ref[0] = jnp.concatenate([cell, cls_logit], axis=-1)                # (1, d + n_cls)


# ----------------------------- parameters ------------------------------------
def init_params(key):
    keys = iter(jax.random.split(key, 128))

    def w(shape, scale=0.02):
        return (scale * jax.random.normal(next(keys), shape)).astype(jnp.float32)

    ones = lambda s: jnp.ones(s, jnp.float32)
    zeros = lambda s: jnp.zeros(s, jnp.float32)

    p = {}
    # GeneEncoder: nn.Embedding(ntoken, d_model, padding_idx) init uniform(-0.1, 0.1)
    emb = jax.random.uniform(next(keys), (NTOKEN, D_MODEL), minval=-0.1, maxval=0.1)
    p["embedding"] = emb.at[PAD_ID].set(0.0).astype(jnp.float32)
    p["gene_ln_g"], p["gene_ln_b"] = ones((1, D_MODEL)), zeros((1, D_MODEL))
    # ContinuousValueEncoder
    p["val_w1"], p["val_b1"] = w((1, D_MODEL)), zeros((1, D_MODEL))
    p["val_w2"], p["val_b2"] = w((D_MODEL, D_MODEL)), zeros((1, D_MODEL))
    p["val_ln_g"], p["val_ln_b"] = ones((1, D_MODEL)), zeros((1, D_MODEL))
    # BatchNorm1d (eval-mode running stats)
    p["bn_g"], p["bn_b"] = ones((1, D_MODEL)), zeros((1, D_MODEL))
    p["bn_rm"], p["bn_rv"] = zeros((1, D_MODEL)), ones((1, D_MODEL))
    # Transformer encoder layers
    layers = []
    for _ in range(NLAYERS):
        layers.append(dict(
            wq=w((D_MODEL, D_MODEL)), wk=w((D_MODEL, D_MODEL)), wv=w((D_MODEL, D_MODEL)),
            bq=zeros((1, D_MODEL)), bk=zeros((1, D_MODEL)), bv=zeros((1, D_MODEL)),
            wo=w((D_MODEL, D_MODEL)), bo=zeros((1, D_MODEL)),
            ln1_g=ones((1, D_MODEL)), ln1_b=zeros((1, D_MODEL)),
            w1=w((D_MODEL, D_HID)), b1=zeros((1, D_HID)),
            w2=w((D_HID, D_MODEL)), b2=zeros((1, D_MODEL)),
            ln2_g=ones((1, D_MODEL)), ln2_b=zeros((1, D_MODEL)),
        ))
    p["layers"] = layers
    # ExprDecoder
    p["dec_w1"], p["dec_b1"] = w((D_MODEL, D_MODEL)), zeros((1, D_MODEL))
    p["dec_w2"], p["dec_b2"] = w((D_MODEL, D_MODEL)), zeros((1, D_MODEL))
    p["dec_w3"], p["dec_b3"] = w((D_MODEL, 1)), zeros((1, 1))
    # ClsDecoder (nlayers_cls=3 -> two [Linear,ReLU,LayerNorm] blocks + out layer)
    p["cls_w1"], p["cls_b1"] = w((D_MODEL, D_MODEL)), zeros((1, D_MODEL))
    p["cls_g1"], p["cls_bb1"] = ones((1, D_MODEL)), zeros((1, D_MODEL))
    p["cls_w2"], p["cls_b2"] = w((D_MODEL, D_MODEL)), zeros((1, D_MODEL))
    p["cls_g2"], p["cls_bb2"] = ones((1, D_MODEL)), zeros((1, D_MODEL))
    p["cls_wo"], p["cls_bo"] = w((D_MODEL, N_CLS)), zeros((1, N_CLS))
    return p


def pack_params(p):
    """Pack ALL weights into two contiguous f32 slabs (one matrix slab + one vector slab),
    folding the softmax 1/sqrt(head_dim) into the Q columns and eval-mode BatchNorm into a
    single (scale, shift) pair at pack time (host side, one-time cost)."""
    qscale = 1.0 / math.sqrt(HEAD_DIM)
    wmat = jnp.zeros((MAT_ROWS, SLAB_W), jnp.float32)
    wvec = jnp.zeros((VEC_ROWS, SLAB_W), jnp.float32)

    def put(slab, row, val):
        val = jnp.asarray(val, jnp.float32)
        if val.ndim == 1:
            val = val.reshape(1, -1)
        r, c = val.shape
        return slab.at[row:row + r, 0:c].set(val)

    wmat = put(wmat, M_VW2, p["val_w2"])
    wvec = put(wvec, R_GLN_G, p["gene_ln_g"])
    wvec = put(wvec, R_GLN_B, p["gene_ln_b"])
    wvec = put(wvec, R_VW1, p["val_w1"])
    wvec = put(wvec, R_VB1, p["val_b1"])
    wvec = put(wvec, R_VB2, p["val_b2"])
    wvec = put(wvec, R_VLN_G, p["val_ln_g"])
    wvec = put(wvec, R_VLN_B, p["val_ln_b"])
    bn_scale = p["bn_g"] / jnp.sqrt(p["bn_rv"] + BN_EPS)       # folded eval-mode BatchNorm1d
    wvec = put(wvec, R_BN_SCALE, bn_scale)
    wvec = put(wvec, R_BN_SHIFT, p["bn_b"] - p["bn_rm"] * bn_scale)

    for l, lp in enumerate(p["layers"]):
        mb = M_LAYER0 + l * M_LAYER_STRIDE
        vb = R_LAYER0 + l * R_LAYER_STRIDE
        wqkv = jnp.concatenate([lp["wq"] * qscale, lp["wk"], lp["wv"]], axis=1)   # (d, 3d)
        bqkv = jnp.concatenate([lp["bq"] * qscale, lp["bk"], lp["bv"]], axis=1)   # (1, 3d)
        wmat = put(wmat, mb + M_WQKV, wqkv)
        wmat = put(wmat, mb + M_WO, lp["wo"])
        wmat = put(wmat, mb + M_W1, lp["w1"])
        wmat = put(wmat, mb + M_W2, lp["w2"])
        wvec = put(wvec, vb + 0, bqkv)
        wvec = put(wvec, vb + 1, lp["bo"])
        wvec = put(wvec, vb + 2, lp["ln1_g"])
        wvec = put(wvec, vb + 3, lp["ln1_b"])
        wvec = put(wvec, vb + 4, lp["b1"])
        wvec = put(wvec, vb + 5, lp["b2"])
        wvec = put(wvec, vb + 6, lp["ln2_g"])
        wvec = put(wvec, vb + 7, lp["ln2_b"])

    wmat = put(wmat, M_DEC_W1, p["dec_w1"])
    wmat = put(wmat, M_DEC_W2, p["dec_w2"])
    wmat = put(wmat, M_CLS_W1, p["cls_w1"])
    wmat = put(wmat, M_CLS_W2, p["cls_w2"])
    wvec = put(wvec, R_DEC_B1, p["dec_b1"])
    wvec = put(wvec, R_DEC_B2, p["dec_b2"])
    wvec = put(wvec, R_DEC_W3, p["dec_w3"].reshape(1, -1))     # (d,1) stored as a row
    wvec = put(wvec, R_DEC_B3, p["dec_b3"])
    wvec = put(wvec, R_CLS_B1, p["cls_b1"])
    wvec = put(wvec, R_CLS_G1, p["cls_g1"])
    wvec = put(wvec, R_CLS_BB1, p["cls_bb1"])
    wvec = put(wvec, R_CLS_B2, p["cls_b2"])
    wvec = put(wvec, R_CLS_G2, p["cls_g2"])
    wvec = put(wvec, R_CLS_BB2, p["cls_bb2"])
    wvec = put(wvec, R_CLS_WO, p["cls_wo"].reshape(1, -1))     # (d, n_cls=1) stored as a row
    wvec = put(wvec, R_CLS_BO, p["cls_bo"])

    return {"embedding": p["embedding"], "wmat": wmat, "wvec": wvec}


# ----------------------------- forward ----------------------------------------
@jax.jit
def flash_transformer_forward(packed, src, values, src_key_padding_mask):
    B, S = src.shape
    # glue: embedding gather (padding_idx row is zero), value reshape, additive mask build
    gene_emb = packed["embedding"][src]                                      # (B, S, d)
    vals = values.astype(jnp.float32)[..., None]                             # (B, S, 1)
    addmask = jnp.where(src_key_padding_mask, NEG_INF, 0.0).astype(jnp.float32)[:, None, :]

    mlm3, cc = pl.pallas_call(
        fused_forward_kernel,
        grid=(B,),                                                           # parallel over B
        in_specs=[
            pl.BlockSpec((1, S, D_MODEL), lambda b: (b, 0, 0)),
            pl.BlockSpec((1, S, 1), lambda b: (b, 0, 0)),
            pl.BlockSpec((1, 1, S), lambda b: (b, 0, 0)),
            pl.BlockSpec((MAT_ROWS, SLAB_W), lambda b: (0, 0)),   # VMEM-resident across grid
            pl.BlockSpec((VEC_ROWS, SLAB_W), lambda b: (0, 0)),
        ],
        out_specs=(
            pl.BlockSpec((1, 1, S), lambda b: (b, 0, 0)),
            pl.BlockSpec((1, 1, D_MODEL + N_CLS), lambda b: (b, 0, 0)),
        ),
        out_shape=(
            jax.ShapeDtypeStruct((B, 1, S), jnp.float32),                 # MLM pred (token-last)
            jax.ShapeDtypeStruct((B, 1, D_MODEL + N_CLS), jnp.float32),   # [cell_emb | cls]
        ),
        compiler_params=pltpu.CompilerParams(
            dimension_semantics=("parallel",)),                           # 2nd TC on v7x
    )(gene_emb, vals, addmask, packed["wmat"], packed["wvec"])

    # TODO(synk): CCE / MVC / ECS / do_dab branches and torch.distributed all_gather are
    #             disabled by default flags and not implemented here.
    return {"mlm_output": mlm3[:, 0, :],
            "cell_emb": cc[:, 0, :D_MODEL],
            "cls_output": cc[:, 0, D_MODEL:]}


# ----------------------------- main --------------------------------------------
if __name__ == "__main__":
    B, S = 2, 8
    key = jax.random.PRNGKey(0)
    k_param, k_src, k_val = jax.random.split(key, 3)

    params = init_params(k_param)
    packed = pack_params(params)

    src = jax.random.randint(k_src, (B, S), 1, NTOKEN, dtype=jnp.int32)
    values = jax.random.uniform(k_val, (B, S), minval=0.0, maxval=5.0, dtype=jnp.float32)
    # second sequence has its last two positions padded
    src_key_padding_mask = jnp.array(
        [[False] * S, [False] * (S - 2) + [True] * 2], dtype=jnp.bool_)
    src = jnp.where(src_key_padding_mask, PAD_ID, src)
    values = jnp.where(src_key_padding_mask, 0.0, values)

    out = flash_transformer_forward(packed, src, values, src_key_padding_mask)
    out = jax.block_until_ready(out)

    assert out["mlm_output"].shape == (B, S)
    assert out["cell_emb"].shape == (B, D_MODEL)
    assert out["cls_output"].shape == (B, N_CLS)
    assert all(bool(jnp.all(jnp.isfinite(v))) for v in out.values())
    print("KERNEL_OK")
</pallas_src>

<mosaic_0001>
module attributes {stable_mosaic.version = 11 : i64} {
  func.func @fused_forward_kernel(%arg0: i32, %arg1: memref<1x8x32xf32, #tpu.memory_space<vmem>>, %arg2: memref<1x8x1xf32, #tpu.memory_space<vmem>>, %arg3: memref<1x1x8xf32, #tpu.memory_space<vmem>>, %arg4: memref<480x128xf32, #tpu.memory_space<vmem>>, %arg5: memref<48x128xf32, #tpu.memory_space<vmem>>, %arg6: memref<1x1x8xf32, #tpu.memory_space<vmem>>, %arg7: memref<1x1x33xf32, #tpu.memory_space<vmem>>) attributes {dimension_semantics = [#tpu.dimension_semantics<parallel>], iteration_bounds = array<i64: 2>, scalar_prefetch = 0 : i64, scratch_operands = 0 : i64, tpu.core_type = #tpu.core_type<tc>, window_params = [{transform_indices = @transform_0, window_bounds = array<i64: 1, 8, 32>}, {transform_indices = @transform_1, window_bounds = array<i64: 1, 8, 1>}, {transform_indices = @transform_2, window_bounds = array<i64: 1, 1, 8>}, {pipeline_mode = #tpu.pipeline_mode<synchronous>, transform_indices = @transform_3, window_bounds = array<i64: 480, 128>}, {pipeline_mode = #tpu.pipeline_mode<synchronous>, transform_indices = @transform_4, window_bounds = array<i64: 48, 128>}, {transform_indices = @transform_5, window_bounds = array<i64: 1, 1, 8>}, {transform_indices = @transform_6, window_bounds = array<i64: 1, 1, 33>}]} {
    %c0 = arith.constant 0 : index
    %c0_0 = arith.constant 0 : index
    %c0_1 = arith.constant 0 : index
    %0 = vector.load %arg1[%c0, %c0_0, %c0_1] : memref<1x8x32xf32, #tpu.memory_space<vmem>>, vector<1x8x32xf32>
    %1 = vector.shape_cast %0 : vector<1x8x32xf32> to vector<8x32xf32>
    %c0_2 = arith.constant 0 : index
    %c0_3 = arith.constant 0 : index
    %2 = vector.load %arg5[%c0_2, %c0_3] : memref<48x128xf32, #tpu.memory_space<vmem>>, vector<1x32xf32>
    %c1 = arith.constant 1 : index
    %c0_4 = arith.constant 0 : index
    %3 = vector.load %arg5[%c1, %c0_4] : memref<48x128xf32, #tpu.memory_space<vmem>>, vector<1x32xf32>
    %cst = arith.constant dense<0.000000e+00> : vector<8xf32>
    %4 = vector.multi_reduction <add>, %1, %cst [1] : vector<8x32xf32> to vector<8xf32>
    %5 = vector.shape_cast %4 : vector<8xf32> to vector<8x1xf32>
    %cst_5 = arith.constant 3.200000e+01 : f32
    %6 = vector.broadcast %cst_5 : f32 to vector<8x1xf32>
    %7 = arith.divf %5, %6 : vector<8x1xf32>
    %8 = vector.broadcast %7 : vector<8x1xf32> to vector<8x32xf32>
    %9 = arith.subf %1, %8 : vector<8x32xf32>
    %10 = arith.mulf %9, %9 : vector<8x32xf32>
    %cst_6 = arith.constant dense<0.000000e+00> : vector<8xf32>
    %11 = vector.multi_reduction <add>, %10, %cst_6 [1] : vector<8x32xf32> to vector<8xf32>
    %12 = vector.shape_cast %11 : vector<8xf32> to vector<8x1xf32>
    %cst_7 = arith.constant 3.200000e+01 : f32
    %13 = vector.broadcast %cst_7 : f32 to vector<8x1xf32>
    %14 = arith.divf %12, %13 : vector<8x1xf32>
    %15 = vector.broadcast %7 : vector<8x1xf32> to vector<8x32xf32>
    %16 = arith.subf %1, %15 : vector<8x32xf32>
    %cst_8 = arith.constant 9.99999974E-6 : f32
    %17 = vector.broadcast %cst_8 : f32 to vector<8x1xf32>
    %18 = arith.addf %14, %17 : vector<8x1xf32>
    %19 = math.rsqrt %18 : vector<8x1xf32>
    %20 = vector.broadcast %19 : vector<8x1xf32> to vector<8x32xf32>
    %21 = arith.mulf %16, %20 : vector<8x32xf32>
    %22 = vector.broadcast %2 : vector<1x32xf32> to vector<8x32xf32>
    %23 = arith.mulf %21, %22 : vector<8x32xf32>
    %24 = vector.broadcast %3 : vector<1x32xf32> to vector<8x32xf32>
    %25 = arith.addf %23, %24 : vector<8x32xf32>
    %c0_9 = arith.constant 0 : index
    %c0_10 = arith.constant 0 : index
    %c0_11 = arith.constant 0 : index
    %26 = vector.load %arg2[%c0_9, %c0_10, %c0_11] : memref<1x8x1xf32, #tpu.memory_space<vmem>>, vector<1x8x1xf32>
    %27 = vector.shape_cast %26 : vector<1x8x1xf32> to vector<8x1xf32>
    %cst_12 = arith.constant 5.120000e+02 : f32
    %28 = vector.broadcast %cst_12 : f32 to vector<8x1xf32>
    %29 = arith.minimumf %27, %28 : vector<8x1xf32>
    %c2 = arith.constant 2 : index
    %c0_13 = arith.constant 0 : index
    %30 = vector.load %arg5[%c2, %c0_13] : memref<48x128xf32, #tpu.memory_space<vmem>>, vector<1x32xf32>
    %31 = vector.broadcast %29 : vector<8x1xf32> to vector<8x32xf32>
    %32 = vector.broadcast %30 : vector<1x32xf32> to vector<8x32xf32>
    %33 = arith.mulf %31, %32 : vector<8x32xf32>
    %c3 = arith.constant 3 : index
    %c0_14 = arith.constant 0 : index
    %34 = vector.load %arg5[%c3, %c0_14] : memref<48x128xf32, #tpu.memory_space<vmem>>, vector<1x32xf32>
    %35 = vector.broadcast %34 : vector<1x32xf32> to vector<8x32xf32>
    %36 = arith.addf %33, %35 : vector<8x32xf32>
    %cst_15 = arith.constant 0.000000e+00 : f32
    %37 = vector.broadcast %cst_15 : f32 to vector<8x32xf32>
    %38 = arith.maximumf %36, %37 : vector<8x32xf32>
    %c0_16 = arith.constant 0 : index
    %c0_17 = arith.constant 0 : index
    %39 = vector.load %arg4[%c0_16, %c0_17] : memref<480x128xf32, #tpu.memory_space<vmem>>, vector<32x32xf32>
    %cst_18 = arith.constant dense<0.000000e+00> : vector<8x32xf32>
    %40 = tpu.matmul %38, %39, %cst_18 {dimension_numbers = #tpu.dot_dimension_numbers<[1], [0], [0], [1], [0, 0, 1, 1], [], []>} : vector<8x32xf32>, vector<32x32xf32>, vector<8x32xf32> -> vector<8x32xf32>
    %c4 = arith.constant 4 : index
    %c0_19 = arith.constant 0 : index
    %41 = vector.load %arg5[%c4, %c0_19] : memref<48x128xf32, #tpu.memory_space<vmem>>, vector<1x32xf32>
    %42 = vector.broadcast %41 : vector<1x32xf32> to vector<8x32xf32>
    %43 = arith.addf %40, %42 : vector<8x32xf32>
    %c5 = arith.constant 5 : index
    %c0_20 = arith.constant 0 : index
    %44 = vector.load %arg5[%c5, %c0_20] : memref<48x128xf32, #tpu.memory_space<vmem>>, vector<1x32xf32>
    %c6 = arith.constant 6 : index
    %c0_21 = arith.constant 0 : index
    %45 = vector.load %arg5[%c6, %c0_21] : memref<48x128xf32, #tpu.memory_space<vmem>>, vector<1x32xf32>
    %cst_22 = arith.constant dense<0.000000e+00> : vector<8xf32>
    %46 = vector.multi_reduction <add>, %43, %cst_22 [1] : vector<8x32xf32> to vector<8xf32>
    %47 = vector.shape_cast %46 : vector<8xf32> to vector<8x1xf32>
    %cst_23 = arith.constant 3.200000e+01 : f32
    %48 = vector.broadcast %cst_23 : f32 to vector<8x1xf32>
    %49 = arith.divf %47, %48 : vector<8x1xf32>
    %50 = vector.broadcast %49 : vector<8x1xf32> to vector<8x32xf32>
    %51 = arith.subf %43, %50 : vector<8x32xf32>
    %52 = arith.mulf %51, %51 : vector<8x32xf32>
    %cst_24 = arith.constant dense<0.000000e+00> : vector<8xf32>
    %53 = vector.multi_reduction <add>, %52, %cst_24 [1] : vector<8x32xf32> to vector<8xf32>
    %54 = vector.shape_cast %53 : vector<8xf32> to vector<8x1xf32>
    %cst_25 = arith.constant 3.200000e+01 : f32
    %55 = vector.broadcast %cst_25 : f32 to vector<8x1xf32>
    %56 = arith.divf %54, %55 : vector<8x1xf32>
    %57 = vector.broadcast %49 : vector<8x1xf32> to vector<8x32xf32>
    %58 = arith.subf %43, %57 : vector<8x32xf32>
    %cst_26 = arith.constant 9.99999974E-6 : f32
    %59 = vector.broadcast %cst_26 : f32 to vector<8x1xf32>
    %60 = arith.addf %56, %59 : vector<8x1xf32>
    %61 = math.rsqrt %60 : vector<8x1xf32>
    %62 = vector.broadcast %61 : vector<8x1xf32> to vector<8x32xf32>
    %63 = arith.mulf %58, %62 : vector<8x32xf32>
    %64 = vector.broadcast %44 : vector<1x32xf32> to vector<8x32xf32>
    %65 = arith.mulf %63, %64 : vector<8x32xf32>
    %66 = vector.broadcast %45 : vector<1x32xf32> to vector<8x32xf32>
    %67 = arith.addf %65, %66 : vector<8x32xf32>
    %68 = arith.addf %25, %67 : vector<8x32xf32>
    %c7 = arith.constant 7 : index
    %c0_27 = arith.constant 0 : index
    %69 = vector.load %arg5[%c7, %c0_27] : memref<48x128xf32, #tpu.memory_space<vmem>>, vector<1x32xf32>
    %70 = vector.broadcast %69 : vector<1x32xf32> to vector<8x32xf32>
    %71 = arith.mulf %68, %70 : vector<8x32xf32>
    %c8 = arith.constant 8 : index
    %c0_28 = arith.constant 0 : index
    %72 = vector.load %arg5[%c8, %c0_28] : memref<48x128xf32, #tpu.memory_space<vmem>>, vector<1x32xf32>
    %73 = vector.broadcast %72 : vector<1x32xf32> to vector<8x32xf32>
    %74 = arith.addf %71, %73 : vector<8x32xf32>
    %c0_29 = arith.constant 0 : index
    %c0_30 = arith.constant 0 : index
    %c0_31 = arith.constant 0 : index
    %75 = vector.load %arg3[%c0_29, %c0_30, %c0_31] : memref<1x1x8xf32, #tpu.memory_space<vmem>>, vector<1x1x8xf32>
    %76 = vector.shape_cast %75 : vector<1x1x8xf32> to vector<1x8xf32>
    %77 = vector.shape_cast %76 : vector<1x8xf32> to vector<1x8xf32>
    %78 = vector.broadcast %77 : vector<1x8xf32> to vector<8x8xf32>
    %c32 = arith.constant 32 : index
    %c0_32 = arith.constant 0 : index
    %79 = vector.load %arg4[%c32, %c0_32] : memref<480x128xf32, #tpu.memory_space<vmem>>, vector<32x96xf32>
    %c64 = arith.constant 64 : index
    %c0_33 = arith.constant 0 : index
    %80 = vector.load %arg4[%c64, %c0_33] : memref<480x128xf32, #tpu.memory_space<vmem>>, vector<32x32xf32>
    %c96 = arith.constant 96 : index
    %c0_34 = arith.constant 0 : index
    %81 = vector.load %arg4[%c96, %c0_34] : memref<480x128xf32, #tpu.memory_space<vmem>>, vector<32x64xf32>
    %c128 = arith.constant 128 : index
    %c0_35 = arith.constant 0 : index
    %82 = vector.load %arg4[%c128, %c0_35] : memref<480x128xf32, #tpu.memory_space<vmem>>, vector<64x32xf32>
    %c16 = arith.constant 16 : index
    %c0_36 = arith.constant 0 : index
    %83 = vector.load %arg5[%c16, %c0_36] : memref<48x128xf32, #tpu.memory_space<vmem>>, vector<1x96xf32>
    %c17 = arith.constant 17 : index
    %c0_37 = arith.constant 0 : index
    %84 = vector.load %arg5[%c17, %c0_37] : memref<48x128xf32, #tpu.memory_space<vmem>>, vector<1x32xf32>
    %c18 = arith.constant 18 : index
    %c0_38 = arith.constant 0 : index
    %85 = vector.load %arg5[%c18, %c0_38] : memref<48x128xf32, #tpu.memory_space<vmem>>, vector<1x32xf32>
    %c19 = arith.constant 19 : index
    %c0_39 = arith.constant 0 : index
    %86 = vector.load %arg5[%c19, %c0_39] : memref<48x128xf32, #tpu.memory_space<vmem>>, vector<1x32xf32>
    %c20 = arith.constant 20 : index
    %c0_40 = arith.constant 0 : index
    %87 = vector.load %arg5[%c20, %c0_40] : memref<48x128xf32, #tpu.memory_space<vmem>>, vector<1x64xf32>
    %c21 = arith.constant 21 : index
    %c0_41 = arith.constant 0 : index
    %88 = vector.load %arg5[%c21, %c0_41] : memref<48x128xf32, #tpu.memory_space<vmem>>, vector<1x32xf32>
    %c22 = arith.constant 22 : index
    %c0_42 = arith.constant 0 : index
    %89 = vector.load %arg5[%c22, %c0_42] : memref<48x128xf32, #tpu.memory_space<vmem>>, vector<1x32xf32>
    %c23 = arith.constant 23 : index
    %c0_43 = arith.constant 0 : index
    %90 = vector.load %arg5[%c23, %c0_43] : memref<48x128xf32, #tpu.memory_space<vmem>>, vector<1x32xf32>
    %cst_44 = arith.constant dense<0.000000e+00> : vector<8x96xf32>
    %91 = tpu.matmul %74, %79, %cst_44 {dimension_numbers = #tpu.dot_dimension_numbers<[1], [0], [0], [1], [0, 0, 1, 1], [], []>} : vector<8x32xf32>, vector<32x96xf32>, vector<8x96xf32> -> vector<8x96xf32>
    %92 = vector.broadcast %83 : vector<1x96xf32> to vector<8x96xf32>
    %93 = arith.addf %91, %92 : vector<8x96xf32>
    %94 = vector.extract_strided_slice %93 {offsets = [0, 0], sizes = [8, 8], strides = [1, 1]} : vector<8x96xf32> to vector<8x8xf32>
    %95 = vector.extract_strided_slice %93 {offsets = [0, 32], sizes = [8, 8], strides = [1, 1]} : vector<8x96xf32> to vector<8x8xf32>
    %96 = vector.extract_strided_slice %93 {offsets = [0, 64], sizes = [8, 8], strides = [1, 1]} : vector<8x96xf32> to vector<8x8xf32>
    "tpu.trace_start"() <{level = 10 : i32, message = "qe,ke->qk"}> : () -> ()
    %cst_45 = arith.constant dense<0.000000e+00> : vector<8x8xf32>
    %97 = tpu.matmul %94, %95, %cst_45 {dimension_numbers = #tpu.dot_dimension_numbers<[1], [1], [0], [0], [0, 0, 1, 0], [], []>} : vector<8x8xf32>, vector<8x8xf32>, vector<8x8xf32> -> vector<8x8xf32>
    "tpu.trace_stop"() : () -> ()
    %98 = arith.addf %97, %78 : vector<8x8xf32>
    %cst_46 = arith.constant dense<0xFF800000> : vector<8xf32>
    %99 = vector.multi_reduction <maximumf>, %98, %cst_46 [1] : vector<8x8xf32> to vector<8xf32>
    %100 = vector.shape_cast %99 : vector<8xf32> to vector<8x1xf32>
    %101 = vector.broadcast %100 : vector<8x1xf32> to vector<8x8xf32>
    %102 = arith.subf %98, %101 : vector<8x8xf32>
    %103 = math.exp %102 : vector<8x8xf32>
    %cst_47 = arith.constant dense<0.000000e+00> : vector<8xf32>
    %104 = vector.multi_reduction <add>, %103, %cst_47 [1] : vector<8x8xf32> to vector<8xf32>
    %105 = vector.shape_cast %104 : vector<8xf32> to vector<8x1xf32>
    %106 = tpu.reciprocal %105 {approx = true} : vector<8x1xf32> -> vector<8x1xf32>
    %107 = vector.broadcast %106 : vector<8x1xf32> to vector<8x8xf32>
    %108 = arith.mulf %103, %107 : vector<8x8xf32>
    %cst_48 = arith.constant dense<0.000000e+00> : vector<8x8xf32>
    %109 = tpu.matmul %108, %96, %cst_48 {dimension_numbers = #tpu.dot_dimension_numbers<[1], [0], [0], [1], [0, 0, 1, 1], [], []>} : vector<8x8xf32>, vector<8x8xf32>, vector<8x8xf32> -> vector<8x8xf32>
    %110 = vector.extract_strided_slice %93 {offsets = [0, 8], sizes = [8, 8], strides = [1, 1]} : vector<8x96xf32> to vector<8x8xf32>
    %111 = vector.extract_strided_slice %93 {offsets = [0, 40], sizes = [8, 8], strides = [1, 1]} : vector<8x96xf32> to vector<8x8xf32>
    %112 = vector.extract_strided_slice %93 {offsets = [0, 72], sizes = [8, 8], strides = [1, 1]} : vector<8x96xf32> to vector<8x8xf32>
    "tpu.trace_start"() <{level = 10 : i32, message = "qe,ke->qk"}> : () -> ()
    %cst_49 = arith.constant dense<0.000000e+00> : vector<8x8xf32>
    %113 = tpu.matmul %110, %111, %cst_49 {dimension_numbers = #tpu.dot_dimension_numbers<[1], [1], [0], [0], [0, 0, 1, 0], [], []>} : vector<8x8xf32>, vector<8x8xf32>, vector<8x8xf32> -> vector<8x8xf32>
    "tpu.trace_stop"() : () -> ()
    %114 = arith.addf %113, %78 : vector<8x8xf32>
    %cst_50 = arith.constant dense<0xFF800000> : vector<8xf32>
    %115 = vector.multi_reduction <maximumf>, %114, %cst_50 [1] : vector<8x8xf32> to vector<8xf32>
    %116 = vector.shape_cast %115 : vector<8xf32> to vector<8x1xf32>
    %117 = vector.broadcast %116 : vector<8x1xf32> to vector<8x8xf32>
    %118 = arith.subf %114, %117 : vector<8x8xf32>
    %119 = math.exp %118 : vector<8x8xf32>
    %cst_51 = arith.constant dense<0.000000e+00> : vector<8xf32>
    %120 = vector.multi_reduction <add>, %119, %cst_51 [1] : vector<8x8xf32> to vector<8xf32>
    %121 = vector.shape_cast %120 : vector<8xf32> to vector<8x1xf32>
    %122 = tpu.reciprocal %121 {approx = true} : vector<8x1xf32> -> vector<8x1xf32>
    %123 = vector.broadcast %122 : vector<8x1xf32> to vector<8x8xf32>
    %124 = arith.mulf %119, %123 : vector<8x8xf32>
    %cst_52 = arith.constant dense<0.000000e+00> : vector<8x8xf32>
    %125 = tpu.matmul %124, %112, %cst_52 {dimension_numbers = #tpu.dot_dimension_numbers<[1], [0], [0], [1], [0, 0, 1, 1], [], []>} : vector<8x8xf32>, vector<8x8xf32>, vector<8x8xf32> -> vector<8x8xf32>
    %126 = vector.extract_strided_slice %93 {offsets = [0, 16], sizes = [8, 8], strides = [1, 1]} : vector<8x96xf32> to vector<8x8xf32>
    %127 = vector.extract_strided_slice %93 {offsets = [0, 48], sizes = [8, 8], strides = [1, 1]} : vector<8x96xf32> to vector<8x8xf32>
    %128 = vector.extract_strided_slice %93 {offsets = [0, 80], sizes = [8, 8], strides = [1, 1]} : vector<8x96xf32> to vector<8x8xf32>
    "tpu.trace_start"() <{level = 10 : i32, message = "qe,ke->qk"}> : () -> ()
    %cst_53 = arith.constant dense<0.000000e+00> : vector<8x8xf32>
    %129 = tpu.matmul %126, %127, %cst_53 {dimension_numbers = #tpu.dot_dimension_numbers<[1], [1], [0], [0], [0, 0, 1, 0], [], []>} : vector<8x8xf32>, vector<8x8xf32>, vector<8x8xf32> -> vector<8x8xf32>
    "tpu.trace_stop"() : () -> ()
    %130 = arith.addf %129, %78 : vector<8x8xf32>
    %cst_54 = arith.constant dense<0xFF800000> : vector<8xf32>
    %131 = vector.multi_reduction <maximumf>, %130, %cst_54 [1] : vector<8x8xf32> to vector<8xf32>
    %132 = vector.shape_cast %131 : vector<8xf32> to vector<8x1xf32>
    %133 = vector.broadcast %132 : vector<8x1xf32> to vector<8x8xf32>
    %134 = arith.subf %130, %133 : vector<8x8xf32>
    %135 = math.exp %134 : vector<8x8xf32>
    %cst_55 = arith.constant dense<0.000000e+00> : vector<8xf32>
    %136 = vector.multi_reduction <add>, %135, %cst_55 [1] : vector<8x8xf32> to vector<8xf32>
    %137 = vector.shape_cast %136 : vector<8xf32> to vector<8x1xf32>
    %138 = tpu.reciprocal %137 {approx = true} : vector<8x1xf32> -> vector<8x1xf32>
    %139 = vector.broadcast %138 : vector<8x1xf32> to vector<8x8xf32>
    %140 = arith.mulf %135, %139 : vector<8x8xf32>
    %cst_56 = arith.constant dense<0.000000e+00> : vector<8x8xf32>
    %141 = tpu.matmul %140, %128, %cst_56 {dimension_numbers = #tpu.dot_dimension_numbers<[1], [0], [0], [1], [0, 0, 1, 1], [], []>} : vector<8x8xf32>, vector<8x8xf32>, vector<8x8xf32> -> vector<8x8xf32>
    %142 = vector.extract_strided_slice %93 {offsets = [0, 24], sizes = [8, 8], strides = [1, 1]} : vector<8x96xf32> to vector<8x8xf32>
    %143 = vector.extract_strided_slice %93 {offsets = [0, 56], sizes = [8, 8], strides = [1, 1]} : vector<8x96xf32> to vector<8x8xf32>
    %144 = vector.extract_strided_slice %93 {offsets = [0, 88], sizes = [8, 8], strides = [1, 1]} : vector<8x96xf32> to vector<8x8xf32>
    "tpu.trace_start"() <{level = 10 : i32, message = "qe,ke->qk"}> : () -> ()
    %cst_57 = arith.constant dense<0.000000e+00> : vector<8x8xf32>
    %145 = tpu.matmul %142, %143, %cst_57 {dimension_numbers = #tpu.dot_dimension_numbers<[1], [1], [0], [0], [0, 0, 1, 0], [], []>} : vector<8x8xf32>, vector<8x8xf32>, vector<8x8xf32> -> vector<8x8xf32>
    "tpu.trace_stop"() : () -> ()
    %146 = arith.addf %145, %78 : vector<8x8xf32>
    %cst_58 = arith.constant dense<0xFF800000> : vector<8xf32>
    %147 = vector.multi_reduction <maximumf>, %146, %cst_58 [1] : vector<8x8xf32> to vector<8xf32>
    %148 = vector.shape_cast %147 : vector<8xf32> to vector<8x1xf32>
    %149 = vector.broadcast %148 : vector<8x1xf32> to vector<8x8xf32>
    %150 = arith.subf %146, %149 : vector<8x8xf32>
    %151 = math.exp %150 : vector<8x8xf32>
    %cst_59 = arith.constant dense<0.000000e+00> : vector<8xf32>
    %152 = vector.multi_reduction <add>, %151, %cst_59 [1] : vector<8x8xf32> to vector<8xf32>
    %153 = vector.shape_cast %152 : vector<8xf32> to vector<8x1xf32>
    %154 = tpu.reciprocal %153 {approx = true} : vector<8x1xf32> -> vector<8x1xf32>
    %155 = vector.broadcast %154 : vector<8x1xf32> to vector<8x8xf32>
    %156 = arith.mulf %151, %155 : vector<8x8xf32>
    %cst_60 = arith.constant dense<0.000000e+00> : vector<8x8xf32>
    %157 = tpu.matmul %156, %144, %cst_60 {dimension_numbers = #tpu.dot_dimension_numbers<[1], [0], [0], [1], [0, 0, 1, 1], [], []>} : vector<8x8xf32>, vector<8x8xf32>, vector<8x8xf32> -> vector<8x8xf32>
    %158 = tpu.concatenate %109, %125, %141, %157 in 1 : vector<8x8xf32>, vector<8x8xf32>, vector<8x8xf32>, vector<8x8xf32> -> vector<8x32xf32>
    %cst_61 = arith.constant dense<0.000000e+00> : vector<8x32xf32>
    %159 = tpu.matmul %158, %80, %cst_61 {dimension_numbers = #tpu.dot_dimension_numbers<[1], [0], [0], [1], [0, 0, 1, 1], [], []>} : vector<8x32xf32>, vector<32x32xf32>, vector<8x32xf32> -> vector<8x32xf32>
    %160 = arith.addf %74, %159 : vector<8x32xf32>
    %161 = vector.broadcast %84 : vector<1x32xf32> to vector<8x32xf32>
    %162 = arith.addf %160, %161 : vector<8x32xf32>
    %cst_62 = arith.constant dense<0.000000e+00> : vector<8xf32>
    %163 = vector.multi_reduction <add>, %162, %cst_62 [1] : vector<8x32xf32> to vector<8xf32>
    %164 = vector.shape_cast %163 : vector<8xf32> to vector<8x1xf32>
    %cst_63 = arith.constant 3.200000e+01 : f32
    %165 = vector.broadcast %cst_63 : f32 to vector<8x1xf32>
    %166 = arith.divf %164, %165 : vector<8x1xf32>
    %167 = vector.broadcast %166 : vector<8x1xf32> to vector<8x32xf32>
    %168 = arith.subf %162, %167 : vector<8x32xf32>
    %169 = arith.mulf %168, %168 : vector<8x32xf32>
    %cst_64 = arith.constant dense<0.000000e+00> : vector<8xf32>
    %170 = vector.multi_reduction <add>, %169, %cst_64 [1] : vector<8x32xf32> to vector<8xf32>
    %171 = vector.shape_cast %170 : vector<8xf32> to vector<8x1xf32>
    %cst_65 = arith.constant 3.200000e+01 : f32
    %172 = vector.broadcast %cst_65 : f32 to vector<8x1xf32>
    %173 = arith.divf %171, %172 : vector<8x1xf32>
    %174 = vector.broadcast %166 : vector<8x1xf32> to vector<8x32xf32>
    %175 = arith.subf %162, %174 : vector<8x32xf32>
    %cst_66 = arith.constant 9.99999974E-6 : f32
    %176 = vector.broadcast %cst_66 : f32 to vector<8x1xf32>
    %177 = arith.addf %173, %176 : vector<8x1xf32>
    %178 = math.rsqrt %177 : vector<8x1xf32>
    %179 = vector.broadcast %178 : vector<8x1xf32> to vector<8x32xf32>
    %180 = arith.mulf %175, %179 : vector<8x32xf32>
    %181 = vector.broadcast %85 : vector<1x32xf32> to vector<8x32xf32>
    %182 = arith.mulf %180, %181 : vector<8x32xf32>
    %183 = vector.broadcast %86 : vector<1x32xf32> to vector<8x32xf32>
    %184 = arith.addf %182, %183 : vector<8x32xf32>
    %cst_67 = arith.constant dense<0.000000e+00> : vector<8x64xf32>
    %185 = tpu.matmul %184, %81, %cst_67 {dimension_numbers = #tpu.dot_dimension_numbers<[1], [0], [0], [1], [0, 0, 1, 1], [], []>} : vector<8x32xf32>, vector<32x64xf32>, vector<8x64xf32> -> vector<8x64xf32>
    %186 = vector.broadcast %87 : vector<1x64xf32> to vector<8x64xf32>
    %187 = arith.addf %185, %186 : vector<8x64xf32>
    %cst_68 = arith.constant 0.000000e+00 : f32
    %188 = vector.broadcast %cst_68 : f32 to vector<8x64xf32>
    %189 = arith.maximumf %187, %188 : vector<8x64xf32>
    %cst_69 = arith.constant dense<0.000000e+00> : vector<8x32xf32>
    %190 = tpu.matmul %189, %82, %cst_69 {dimension_numbers = #tpu.dot_dimension_numbers<[1], [0], [0], [1], [0, 0, 1, 1], [], []>} : vector<8x64xf32>, vector<64x32xf32>, vector<8x32xf32> -> vector<8x32xf32>
    %191 = vector.broadcast %88 : vector<1x32xf32> to vector<8x32xf32>
    %192 = arith.addf %190, %191 : vector<8x32xf32>
    %193 = arith.addf %184, %192 : vector<8x32xf32>
    %cst_70 = arith.constant dense<0.000000e+00> : vector<8xf32>
    %194 = vector.multi_reduction <add>, %193, %cst_70 [1] : vector<8x32xf32> to vector<8xf32>
    %195 = vector.shape_cast %194 : vector<8xf32> to vector<8x1xf32>
    %cst_71 = arith.constant 3.200000e+01 : f32
    %196 = vector.broadcast %cst_71 : f32 to vector<8x1xf32>
    %197 = arith.divf %195, %196 : vector<8x1xf32>
    %198 = vector.broadcast %197 : vector<8x1xf32> to vector<8x32xf32>
    %199 = arith.subf %193, %198 : vector<8x32xf32>
    %200 = arith.mulf %199, %199 : vector<8x32xf32>
    %cst_72 = arith.constant dense<0.000000e+00> : vector<8xf32>
    %201 = vector.multi_reduction <add>, %200, %cst_72 [1] : vector<8x32xf32> to vector<8xf32>
    %202 = vector.shape_cast %201 : vector<8xf32> to vector<8x1xf32>
    %cst_73 = arith.constant 3.200000e+01 : f32
    %203 = vector.broadcast %cst_73 : f32 to vector<8x1xf32>
    %204 = arith.divf %202, %203 : vector<8x1xf32>
    %205 = vector.broadcast %197 : vector<8x1xf32> to vector<8x32xf32>
    %206 = arith.subf %193, %205 : vector<8x32xf32>
    %cst_74 = arith.constant 9.99999974E-6 : f32
    %207 = vector.broadcast %cst_74 : f32 to vector<8x1xf32>
    %208 = arith.addf %204, %207 : vector<8x1xf32>
    %209 = math.rsqrt %208 : vector<8x1xf32>
    %210 = vector.broadcast %209 : vector<8x1xf32> to vector<8x32xf32>
    %211 = arith.mulf %206, %210 : vector<8x32xf32>
    %212 = vector.broadcast %89 : vector<1x32xf32> to vector<8x32xf32>
    %213 = arith.mulf %211, %212 : vector<8x32xf32>
    %214 = vector.broadcast %90 : vector<1x32xf32> to vector<8x32xf32>
    %215 = arith.addf %213, %214 : vector<8x32xf32>
    %c192 = arith.constant 192 : index
    %c0_75 = arith.constant 0 : index
    %216 = vector.load %arg4[%c192, %c0_75] : memref<480x128xf32, #tpu.memory_space<vmem>>, vector<32x96xf32>
    %c224 = arith.constant 224 : index
    %c0_76 = arith.constant 0 : index
    %217 = vector.load %arg4[%c224, %c0_76] : memref<480x128xf32, #tpu.memory_space<vmem>>, vector<32x32xf32>
    %c256 = arith.constant 256 : index
    %c0_77 = arith.constant 0 : index
    %218 = vector.load %arg4[%c256, %c0_77] : memref<480x128xf32, #tpu.memory_space<vmem>>, vector<32x64xf32>
    %c288 = arith.constant 288 : index
    %c0_78 = arith.constant 0 : index
    %219 = vector.load %arg4[%c288, %c0_78] : memref<480x128xf32, #tpu.memory_space<vmem>>, vector<64x32xf32>
    %c24 = arith.constant 24 : index
    %c0_79 = arith.constant 0 : index
    %220 = vector.load %arg5[%c24, %c0_79] : memref<48x128xf32, #tpu.memory_space<vmem>>, vector<1x96xf32>
    %c25 = arith.constant 25 : index
    %c0_80 = arith.constant 0 : index
    %221 = vector.load %arg5[%c25, %c0_80] : memref<48x128xf32, #tpu.memory_space<vmem>>, vector<1x32xf32>
    %c26 = arith.constant 26 : index
    %c0_81 = arith.constant 0 : index
    %222 = vector.load %arg5[%c26, %c0_81] : memref<48x128xf32, #tpu.memory_space<vmem>>, vector<1x32xf32>
    %c27 = arith.constant 27 : index
    %c0_82 = arith.constant 0 : index
    %223 = vector.load %arg5[%c27, %c0_82] : memref<48x128xf32, #tpu.memory_space<vmem>>, vector<1x32xf32>
    %c28 = arith.constant 28 : index
    %c0_83 = arith.constant 0 : index
    %224 = vector.load %arg5[%c28, %c0_83] : memref<48x128xf32, #tpu.memory_space<vmem>>, vector<1x64xf32>
    %c29 = arith.constant 29 : index
    %c0_84 = arith.constant 0 : index
    %225 = vector.load %arg5[%c29, %c0_84] : memref<48x128xf32, #tpu.memory_space<vmem>>, vector<1x32xf32>
    %c30 = arith.constant 30 : index
    %c0_85 = arith.constant 0 : index
    %226 = vector.load %arg5[%c30, %c0_85] : memref<48x128xf32, #tpu.memory_space<vmem>>, vector<1x32xf32>
    %c31 = arith.constant 31 : index
    %c0_86 = arith.constant 0 : index
    %227 = vector.load %arg5[%c31, %c0_86] : memref<48x128xf32, #tpu.memory_space<vmem>>, vector<1x32xf32>
    %cst_87 = arith.constant dense<0.000000e+00> : vector<8x96xf32>
    %228 = tpu.matmul %215, %216, %cst_87 {dimension_numbers = #tpu.dot_dimension_numbers<[1], [0], [0], [1], [0, 0, 1, 1], [], []>} : vector<8x32xf32>, vector<32x96xf32>, vector<8x96xf32> -> vector<8x96xf32>
    %229 = vector.broadcast %220 : vector<1x96xf32> to vector<8x96xf32>
    %230 = arith.addf %228, %229 : vector<8x96xf32>
    %231 = vector.extract_strided_slice %230 {offsets = [0, 0], sizes = [8, 8], strides = [1, 1]} : vector<8x96xf32> to vector<8x8xf32>
    %232 = vector.extract_strided_slice %230 {offsets = [0, 32], sizes = [8, 8], strides = [1, 1]} : vector<8x96xf32> to vector<8x8xf32>
    %233 = vector.extract_strided_slice %230 {offsets = [0, 64], sizes = [8, 8], strides = [1, 1]} : vector<8x96xf32> to vector<8x8xf32>
    "tpu.trace_start"() <{level = 10 : i32, message = "qe,ke->qk"}> : () -> ()
    %cst_88 = arith.constant dense<0.000000e+00> : vector<8x8xf32>
    %234 = tpu.matmul %231, %232, %cst_88 {dimension_numbers = #tpu.dot_dimension_numbers<[1], [1], [0], [0], [0, 0, 1, 0], [], []>} : vector<8x8xf32>, vector<8x8xf32>, vector<8x8xf32> -> vector<8x8xf32>
    "tpu.trace_stop"() : () -> ()
    %235 = arith.addf %234, %78 : vector<8x8xf32>
    %cst_89 = arith.constant dense<0xFF800000> : vector<8xf32>
    %236 = vector.multi_reduction <maximumf>, %235, %cst_89 [1] : vector<8x8xf32> to vector<8xf32>
    %237 = vector.shape_cast %236 : vector<8xf32> to vector<8x1xf32>
    %238 = vector.broadcast %237 : vector<8x1xf32> to vector<8x8xf32>
    %239 = arith.subf %235, %238 : vector<8x8xf32>
    %240 = math.exp %239 : vector<8x8xf32>
    %cst_90 = arith.constant dense<0.000000e+00> : vector<8xf32>
    %241 = vector.multi_reduction <add>, %240, %cst_90 [1] : vector<8x8xf32> to vector<8xf32>
    %242 = vector.shape_cast %241 : vector<8xf32> to vector<8x1xf32>
    %243 = tpu.reciprocal %242 {approx = true} : vector<8x1xf32> -> vector<8x1xf32>
    %244 = vector.broadcast %243 : vector<8x1xf32> to vector<8x8xf32>
    %245 = arith.mulf %240, %244 : vector<8x8xf32>
    %cst_91 = arith.constant dense<0.000000e+00> : vector<8x8xf32>
    %246 = tpu.matmul %245, %233, %cst_91 {dimension_numbers = #tpu.dot_dimension_numbers<[1], [0], [0], [1], [0, 0, 1, 1], [], []>} : vector<8x8xf32>, vector<8x8xf32>, vector<8x8xf32> -> vector<8x8xf32>
    %247 = vector.extract_strided_slice %230 {offsets = [0, 8], sizes = [8, 8], strides = [1, 1]} : vector<8x96xf32> to vector<8x8xf32>
    %248 = vector.extract_strided_slice %230 {offsets = [0, 40], sizes = [8, 8], strides = [1, 1]} : vector<8x96xf32> to vector<8x8xf32>
    %249 = vector.extract_strided_slice %230 {offsets = [0, 72], sizes = [8, 8], strides = [1, 1]} : vector<8x96xf32> to vector<8x8xf32>
    "tpu.trace_start"() <{level = 10 : i32, message = "qe,ke->qk"}> : () -> ()
    %cst_92 = arith.constant dense<0.000000e+00> : vector<8x8xf32>
    %250 = tpu.matmul %247, %248, %cst_92 {dimension_numbers = #tpu.dot_dimension_numbers<[1], [1], [0], [0], [0, 0, 1, 0], [], []>} : vector<8x8xf32>, vector<8x8xf32>, vector<8x8xf32> -> vector<8x8xf32>
    "tpu.trace_stop"() : () -> ()
    %251 = arith.addf %250, %78 : vector<8x8xf32>
    %cst_93 = arith.constant dense<0xFF800000> : vector<8xf32>
    %252 = vector.multi_reduction <maximumf>, %251, %cst_93 [1] : vector<8x8xf32> to vector<8xf32>
    %253 = vector.shape_cast %252 : vector<8xf32> to vector<8x1xf32>
    %254 = vector.broadcast %253 : vector<8x1xf32> to vector<8x8xf32>
    %255 = arith.subf %251, %254 : vector<8x8xf32>
    %256 = math.exp %255 : vector<8x8xf32>
    %cst_94 = arith.constant dense<0.000000e+00> : vector<8xf32>
    %257 = vector.multi_reduction <add>, %256, %cst_94 [1] : vector<8x8xf32> to vector<8xf32>
    %258 = vector.shape_cast %257 : vector<8xf32> to vector<8x1xf32>
    %259 = tpu.reciprocal %258 {approx = true} : vector<8x1xf32> -> vector<8x1xf32>
    %260 = vector.broadcast %259 : vector<8x1xf32> to vector<8x8xf32>
    %261 = arith.mulf %256, %260 : vector<8x8xf32>
    %cst_95 = arith.constant dense<0.000000e+00> : vector<8x8xf32>
    %262 = tpu.matmul %261, %249, %cst_95 {dimension_numbers = #tpu.dot_dimension_numbers<[1], [0], [0], [1], [0, 0, 1, 1], [], []>} : vector<8x8xf32>, vector<8x8xf32>, vector<8x8xf32> -> vector<8x8xf32>
    %263 = vector.extract_strided_slice %230 {offsets = [0, 16], sizes = [8, 8], strides = [1, 1]} : vector<8x96xf32> to vector<8x8xf32>
    %264 = vector.extract_strided_slice %230 {offsets = [0, 48], sizes = [8, 8], strides = [1, 1]} : vector<8x96xf32> to vector<8x8xf32>
    %265 = vector.extract_strided_slice %230 {offsets = [0, 80], sizes = [8, 8], strides = [1, 1]} : vector<8x96xf32> to vector<8x8xf32>
    "tpu.trace_start"() <{level = 10 : i32, message = "qe,ke->qk"}> : () -> ()
    %cst_96 = arith.constant dense<0.000000e+00> : vector<8x8xf32>
    %266 = tpu.matmul %263, %264, %cst_96 {dimension_numbers = #tpu.dot_dimension_numbers<[1], [1], [0], [0], [0, 0, 1, 0], [], []>} : vector<8x8xf32>, vector<8x8xf32>, vector<8x8xf32> -> vector<8x8xf32>
    "tpu.trace_stop"() : () -> ()
    %267 = arith.addf %266, %78 : vector<8x8xf32>
    %cst_97 = arith.constant dense<0xFF800000> : vector<8xf32>
    %268 = vector.multi_reduction <maximumf>, %267, %cst_97 [1] : vector<8x8xf32> to vector<8xf32>
    %269 = vector.shape_cast %268 : vector<8xf32> to vector<8x1xf32>
    %270 = vector.broadcast %269 : vector<8x1xf32> to vector<8x8xf32>
    %271 = arith.subf %267, %270 : vector<8x8xf32>
    %272 = math.exp %271 : vector<8x8xf32>
    %cst_98 = arith.constant dense<0.000000e+00> : vector<8xf32>
    %273 = vector.multi_reduction <add>, %272, %cst_98 [1] : vector<8x8xf32> to vector<8xf32>
    %274 = vector.shape_cast %273 : vector<8xf32> to vector<8x1xf32>
    %275 = tpu.reciprocal %274 {approx = true} : vector<8x1xf32> -> vector<8x1xf32>
    %276 = vector.broadcast %275 : vector<8x1xf32> to vector<8x8xf32>
    %277 = arith.mulf %272, %276 : vector<8x8xf32>
    %cst_99 = arith.constant dense<0.000000e+00> : vector<8x8xf32>
    %278 = tpu.matmul %277, %265, %cst_99 {dimension_numbers = #tpu.dot_dimension_numbers<[1], [0], [0], [1], [0, 0, 1, 1], [], []>} : vector<8x8xf32>, vector<8x8xf32>, vector<8x8xf32> -> vector<8x8xf32>
    %279 = vector.extract_strided_slice %230 {offsets = [0, 24], sizes = [8, 8], strides = [1, 1]} : vector<8x96xf32> to vector<8x8xf32>
    %280 = vector.extract_strided_slice %230 {offsets = [0, 56], sizes = [8, 8], strides = [1, 1]} : vector<8x96xf32> to vector<8x8xf32>
    %281 = vector.extract_strided_slice %230 {offsets = [0, 88], sizes = [8, 8], strides = [1, 1]} : vector<8x96xf32> to vector<8x8xf32>
    "tpu.trace_start"() <{level = 10 : i32, message = "qe,ke->qk"}> : () -> ()
    %cst_100 = arith.constant dense<0.000000e+00> : vector<8x8xf32>
    %282 = tpu.matmul %279, %280, %cst_100 {dimension_numbers = #tpu.dot_dimension_numbers<[1], [1], [0], [0], [0, 0, 1, 0], [], []>} : vector<8x8xf32>, vector<8x8xf32>, vector<8x8xf32> -> vector<8x8xf32>
    "tpu.trace_stop"() : () -> ()
    %283 = arith.addf %282, %78 : vector<8x8xf32>
    %cst_101 = arith.constant dense<0xFF800000> : vector<8xf32>
    %284 = vector.multi_reduction <maximumf>, %283, %cst_101 [1] : vector<8x8xf32> to vector<8xf32>
    %285 = vector.shape_cast %284 : vector<8xf32> to vector<8x1xf32>
    %286 = vector.broadcast %285 : vector<8x1xf32> to vector<8x8xf32>
    %287 = arith.subf %283, %286 : vector<8x8xf32>
    %288 = math.exp %287 : vector<8x8xf32>
    %cst_102 = arith.constant dense<0.000000e+00> : vector<8xf32>
    %289 = vector.multi_reduction <add>, %288, %cst_102 [1] : vector<8x8xf32> to vector<8xf32>
    %290 = vector.shape_cast %289 : vector<8xf32> to vector<8x1xf32>
    %291 = tpu.reciprocal %290 {approx = true} : vector<8x1xf32> -> vector<8x1xf32>
    %292 = vector.broadcast %291 : vector<8x1xf32> to vector<8x8xf32>
    %293 = arith.mulf %288, %292 : vector<8x8xf32>
    %cst_103 = arith.constant dense<0.000000e+00> : vector<8x8xf32>
    %294 = tpu.matmul %293, %281, %cst_103 {dimension_numbers = #tpu.dot_dimension_numbers<[1], [0], [0], [1], [0, 0, 1, 1], [], []>} : vector<8x8xf32>, vector<8x8xf32>, vector<8x8xf32> -> vector<8x8xf32>
    %295 = tpu.concatenate %246, %262, %278, %294 in 1 : vector<8x8xf32>, vector<8x8xf32>, vector<8x8xf32>, vector<8x8xf32> -> vector<8x32xf32>
    %cst_104 = arith.constant dense<0.000000e+00> : vector<8x32xf32>
    %296 = tpu.matmul %295, %217, %cst_104 {dimension_numbers = #tpu.dot_dimension_numbers<[1], [0], [0], [1], [0, 0, 1, 1], [], []>} : vector<8x32xf32>, vector<32x32xf32>, vector<8x32xf32> -> vector<8x32xf32>
    %297 = arith.addf %215, %296 : vector<8x32xf32>
    %298 = vector.broadcast %221 : vector<1x32xf32> to vector<8x32xf32>
    %299 = arith.addf %297, %298 : vector<8x32xf32>
    %cst_105 = arith.constant dense<0.000000e+00> : vector<8xf32>
    %300 = vector.multi_reduction <add>, %299, %cst_105 [1] : vector<8x32xf32> to vector<8xf32>
    %301 = vector.shape_cast %300 : vector<8xf32> to vector<8x1xf32>
    %cst_106 = arith.constant 3.200000e+01 : f32
    %302 = vector.broadcast %cst_106 : f32 to vector<8x1xf32>
    %303 = arith.divf %301, %302 : vector<8x1xf32>
    %304 = vector.broadcast %303 : vector<8x1xf32> to vector<8x32xf32>
    %305 = arith.subf %299, %304 : vector<8x32xf32>
    %306 = arith.mulf %305, %305 : vector<8x32xf32>
    %cst_107 = arith.constant dense<0.000000e+00> : vector<8xf32>
    %307 = vector.multi_reduction <add>, %306, %cst_107 [1] : vector<8x32xf32> to vector<8xf32>
    %308 = vector.shape_cast %307 : vector<8xf32> to vector<8x1xf32>
    %cst_108 = arith.constant 3.200000e+01 : f32
    %309 = vector.broadcast %cst_108 : f32 to vector<8x1xf32>
    %310 = arith.divf %308, %309 : vector<8x1xf32>
    %311 = vector.broadcast %303 : vector<8x1xf32> to vector<8x32xf32>
    %312 = arith.subf %299, %311 : vector<8x32xf32>
    %cst_109 = arith.constant 9.99999974E-6 : f32
    %313 = vector.broadcast %cst_109 : f32 to vector<8x1xf32>
    %314 = arith.addf %310, %313 : vector<8x1xf32>
    %315 = math.rsqrt %314 : vector<8x1xf32>
    %316 = vector.broadcast %315 : vector<8x1xf32> to vector<8x32xf32>
    %317 = arith.mulf %312, %316 : vector<8x32xf32>
    %318 = vector.broadcast %222 : vector<1x32xf32> to vector<8x32xf32>
    %319 = arith.mulf %317, %318 : vector<8x32xf32>
    %320 = vector.broadcast %223 : vector<1x32xf32> to vector<8x32xf32>
    %321 = arith.addf %319, %320 : vector<8x32xf32>
    %cst_110 = arith.constant dense<0.000000e+00> : vector<8x64xf32>
    %322 = tpu.matmul %321, %218, %cst_110 {dimension_numbers = #tpu.dot_dimension_numbers<[1], [0], [0], [1], [0, 0, 1, 1], [], []>} : vector<8x32xf32>, vector<32x64xf32>, vector<8x64xf32> -> vector<8x64xf32>
    %323 = vector.broadcast %224 : vector<1x64xf32> to vector<8x64xf32>
    %324 = arith.addf %322, %323 : vector<8x64xf32>
    %cst_111 = arith.constant 0.000000e+00 : f32
    %325 = vector.broadcast %cst_111 : f32 to vector<8x64xf32>
    %326 = arith.maximumf %324, %325 : vector<8x64xf32>
    %cst_112 = arith.constant dense<0.000000e+00> : vector<8x32xf32>
    %327 = tpu.matmul %326, %219, %cst_112 {dimension_numbers = #tpu.dot_dimension_numbers<[1], [0], [0], [1], [0, 0, 1, 1], [], []>} : vector<8x64xf32>, vector<64x32xf32>, vector<8x32xf32> -> vector<8x32xf32>
    %328 = vector.broadcast %225 : vector<1x32xf32> to vector<8x32xf32>
    %329 = arith.addf %327, %328 : vector<8x32xf32>
    %330 = arith.addf %321, %329 : vector<8x32xf32>
    %cst_113 = arith.constant dense<0.000000e+00> : vector<8xf32>
    %331 = vector.multi_reduction <add>, %330, %cst_113 [1] : vector<8x32xf32> to vector<8xf32>
    %332 = vector.shape_cast %331 : vector<8xf32> to vector<8x1xf32>
    %cst_114 = arith.constant 3.200000e+01 : f32
    %333 = vector.broadcast %cst_114 : f32 to vector<8x1xf32>
    %334 = arith.divf %332, %333 : vector<8x1xf32>
    %335 = vector.broadcast %334 : vector<8x1xf32> to vector<8x32xf32>
    %336 = arith.subf %330, %335 : vector<8x32xf32>
    %337 = arith.mulf %336, %336 : vector<8x32xf32>
    %cst_115 = arith.constant dense<0.000000e+00> : vector<8xf32>
    %338 = vector.multi_reduction <add>, %337, %cst_115 [1] : vector<8x32xf32> to vector<8xf32>
    %339 = vector.shape_cast %338 : vector<8xf32> to vector<8x1xf32>
    %cst_116 = arith.constant 3.200000e+01 : f32
    %340 = vector.broadcast %cst_116 : f32 to vector<8x1xf32>
    %341 = arith.divf %339, %340 : vector<8x1xf32>
    %342 = vector.broadcast %334 : vector<8x1xf32> to vector<8x32xf32>
    %343 = arith.subf %330, %342 : vector<8x32xf32>
    %cst_117 = arith.constant 9.99999974E-6 : f32
    %344 = vector.broadcast %cst_117 : f32 to vector<8x1xf32>
    %345 = arith.addf %341, %344 : vector<8x1xf32>
    %346 = math.rsqrt %345 : vector<8x1xf32>
    %347 = vector.broadcast %346 : vector<8x1xf32> to vector<8x32xf32>
    %348 = arith.mulf %343, %347 : vector<8x32xf32>
    %349 = vector.broadcast %226 : vector<1x32xf32> to vector<8x32xf32>
    %350 = arith.mulf %348, %349 : vector<8x32xf32>
    %351 = vector.broadcast %227 : vector<1x32xf32> to vector<8x32xf32>
    %352 = arith.addf %350, %351 : vector<8x32xf32>
    %c352 = arith.constant 352 : index
    %c0_118 = arith.constant 0 : index
    %353 = vector.load %arg4[%c352, %c0_118] : memref<480x128xf32, #tpu.memory_space<vmem>>, vector<32x32xf32>
    %cst_119 = arith.constant dense<0.000000e+00> : vector<8x32xf32>
    %354 = tpu.matmul %352, %353, %cst_119 {dimension_numbers = #tpu.dot_dimension_numbers<[1], [0], [0], [1], [0, 0, 1, 1], [], []>} : vector<8x32xf32>, vector<32x32xf32>, vector<8x32xf32> -> vector<8x32xf32>
    %c32_120 = arith.constant 32 : index
    %c0_121 = arith.constant 0 : index
    %355 = vector.load %arg5[%c32_120, %c0_121] : memref<48x128xf32, #tpu.memory_space<vmem>>, vector<1x32xf32>
    %356 = vector.broadcast %355 : vector<1x32xf32> to vector<8x32xf32>
    %357 = arith.addf %354, %356 : vector<8x32xf32>
    %cst_122 = arith.constant 0.000000e+00 : f32
    %358 = vector.broadcast %cst_122 : f32 to vector<8x32xf32>
    %359 = arith.cmpf oge, %357, %358 : vector<8x32xf32>
    %cst_123 = arith.constant 0.00999999977 : f32
    %360 = vector.broadcast %cst_123 : f32 to vector<8x32xf32>
    %361 = arith.mulf %360, %357 : vector<8x32xf32>
    %362 = arith.select %359, %357, %361 : vector<8x32xi1>, vector<8x32xf32>
    %c384 = arith.constant 384 : index
    %c0_124 = arith.constant 0 : index
    %363 = vector.load %arg4[%c384, %c0_124] : memref<480x128xf32, #tpu.memory_space<vmem>>, vector<32x32xf32>
    %cst_125 = arith.constant dense<0.000000e+00> : vector<8x32xf32>
    %364 = tpu.matmul %362, %363, %cst_125 {dimension_numbers = #tpu.dot_dimension_numbers<[1], [0], [0], [1], [0, 0, 1, 1], [], []>} : vector<8x32xf32>, vector<32x32xf32>, vector<8x32xf32> -> vector<8x32xf32>
    %c33 = arith.constant 33 : index
    %c0_126 = arith.constant 0 : index
    %365 = vector.load %arg5[%c33, %c0_126] : memref<48x128xf32, #tpu.memory_space<vmem>>, vector<1x32xf32>
    %366 = vector.broadcast %365 : vector<1x32xf32> to vector<8x32xf32>
    %367 = arith.addf %364, %366 : vector<8x32xf32>
    %cst_127 = arith.constant 0.000000e+00 : f32
    %368 = vector.broadcast %cst_127 : f32 to vector<8x32xf32>
    %369 = arith.cmpf oge, %367, %368 : vector<8x32xf32>
    %cst_128 = arith.constant 0.00999999977 : f32
    %370 = vector.broadcast %cst_128 : f32 to vector<8x32xf32>
    %371 = arith.mulf %370, %367 : vector<8x32xf32>
    %372 = arith.select %369, %367, %371 : vector<8x32xi1>, vector<8x32xf32>
    %c34 = arith.constant 34 : index
    %c0_129 = arith.constant 0 : index
    %373 = vector.load %arg5[%c34, %c0_129] : memref<48x128xf32, #tpu.memory_space<vmem>>, vector<1x32xf32>
    "tpu.trace_start"() <{level = 10 : i32, message = "nd,sd->ns"}> : () -> ()
    %cst_130 = arith.constant dense<0.000000e+00> : vector<1x8xf32>
    %374 = tpu.matmul %373, %372, %cst_130 {dimension_numbers = #tpu.dot_dimension_numbers<[1], [1], [0], [0], [0, 0, 1, 0], [], []>} : vector<1x32xf32>, vector<8x32xf32>, vector<1x8xf32> -> vector<1x8xf32>
    "tpu.trace_stop"() : () -> ()
    %c35 = arith.constant 35 : index
    %c0_131 = arith.constant 0 : index
    %375 = vector.load %arg5[%c35, %c0_131] : memref<48x128xf32, #tpu.memory_space<vmem>>, vector<1x1xf32>
    %376 = vector.broadcast %375 : vector<1x1xf32> to vector<1x8xf32>
    %377 = arith.addf %374, %376 : vector<1x8xf32>
    %c0_132 = arith.constant 0 : index
    %c0_133 = arith.constant 0 : index
    %c0_134 = arith.constant 0 : index
    %378 = vector.load %arg6[%c0_132, %c0_133, %c0_134] : memref<1x1x8xf32, #tpu.memory_space<vmem>>, vector<1x1x8xf32>
    %379 = vector.shape_cast %378 : vector<1x1x8xf32> to vector<1x8xf32>
    %380 = vector.shape_cast %377 : vector<1x8xf32> to vector<1x1x8xf32>
    tpu.vector_store %arg6[%c0_132, %c0_133, %c0_134], %380 {strides = array<i32>} : memref<1x1x8xf32, #tpu.memory_space<vmem>>, vector<1x1x8xf32>,
    %381 = vector.extract_strided_slice %352 {offsets = [0, 0], sizes = [1, 32], strides = [1, 1]} : vector<8x32xf32> to vector<1x32xf32>
    %c416 = arith.constant 416 : index
    %c0_135 = arith.constant 0 : index
    %382 = vector.load %arg4[%c416, %c0_135] : memref<480x128xf32, #tpu.memory_space<vmem>>, vector<32x32xf32>
    %cst_136 = arith.constant dense<0.000000e+00> : vector<1x32xf32>
    %383 = tpu.matmul %381, %382, %cst_136 {dimension_numbers = #tpu.dot_dimension_numbers<[1], [0], [0], [1], [0, 0, 1, 1], [], []>} : vector<1x32xf32>, vector<32x32xf32>, vector<1x32xf32> -> vector<1x32xf32>
    %c36 = arith.constant 36 : index
    %c0_137 = arith.constant 0 : index
    %384 = vector.load %arg5[%c36, %c0_137] : memref<48x128xf32, #tpu.memory_space<vmem>>, vector<1x32xf32>
    %385 = arith.addf %383, %384 : vector<1x32xf32>
    %cst_138 = arith.constant 0.000000e+00 : f32
    %386 = vector.broadcast %cst_138 : f32 to vector<1x32xf32>
    %387 = arith.maximumf %385, %386 : vector<1x32xf32>
    %c37 = arith.constant 37 : index
    %c0_139 = arith.constant 0 : index
    %388 = vector.load %arg5[%c37, %c0_139] : memref<48x128xf32, #tpu.memory_space<vmem>>, vector<1x32xf32>
    %c38 = arith.constant 38 : index
    %c0_140 = arith.constant 0 : index
    %389 = vector.load %arg5[%c38, %c0_140] : memref<48x128xf32, #tpu.memory_space<vmem>>, vector<1x32xf32>
    %cst_141 = arith.constant dense<0.000000e+00> : vector<1xf32>
    %390 = vector.multi_reduction <add>, %387, %cst_141 [1] : vector<1x32xf32> to vector<1xf32>
    %391 = vector.shape_cast %390 : vector<1xf32> to vector<1x1xf32>
    %cst_142 = arith.constant 3.200000e+01 : f32
    %392 = vector.broadcast %cst_142 : f32 to vector<1x1xf32>
    %393 = arith.divf %391, %392 : vector<1x1xf32>
    %394 = vector.broadcast %393 : vector<1x1xf32> to vector<1x32xf32>
    %395 = arith.subf %387, %394 : vector<1x32xf32>
    %396 = arith.mulf %395, %395 : vector<1x32xf32>
    %cst_143 = arith.constant dense<0.000000e+00> : vector<1xf32>
    %397 = vector.multi_reduction <add>, %396, %cst_143 [1] : vector<1x32xf32> to vector<1xf32>
    %398 = vector.shape_cast %397 : vector<1xf32> to vector<1x1xf32>
    %cst_144 = arith.constant 3.200000e+01 : f32
    %399 = vector.broadcast %cst_144 : f32 to vector<1x1xf32>
    %400 = arith.divf %398, %399 : vector<1x1xf32>
    %401 = vector.broadcast %393 : vector<1x1xf32> to vector<1x32xf32>
    %402 = arith.subf %387, %401 : vector<1x32xf32>
    %cst_145 = arith.constant 9.99999974E-6 : f32
    %403 = vector.broadcast %cst_145 : f32 to vector<1x1xf32>
    %404 = arith.addf %400, %403 : vector<1x1xf32>
    %405 = math.rsqrt %404 : vector<1x1xf32>
    %406 = vector.broadcast %405 : vector<1x1xf32> to vector<1x32xf32>
    %407 = arith.mulf %402, %406 : vector<1x32xf32>
    %408 = arith.mulf %407, %388 : vector<1x32xf32>
    %409 = arith.addf %408, %389 : vector<1x32xf32>
    %c448 = arith.constant 448 : index
    %c0_146 = arith.constant 0 : index
    %410 = vector.load %arg4[%c448, %c0_146] : memref<480x128xf32, #tpu.memory_space<vmem>>, vector<32x32xf32>
    %cst_147 = arith.constant dense<0.000000e+00> : vector<1x32xf32>
    %411 = tpu.matmul %409, %410, %cst_147 {dimension_numbers = #tpu.dot_dimension_numbers<[1], [0], [0], [1], [0, 0, 1, 1], [], []>} : vector<1x32xf32>, vector<32x32xf32>, vector<1x32xf32> -> vector<1x32xf32>
    %c39 = arith.constant 39 : index
    %c0_148 = arith.constant 0 : index
    %412 = vector.load %arg5[%c39, %c0_148] : memref<48x128xf32, #tpu.memory_space<vmem>>, vector<1x32xf32>
    %413 = arith.addf %411, %412 : vector<1x32xf32>
    %cst_149 = arith.constant 0.000000e+00 : f32
    %414 = vector.broadcast %cst_149 : f32 to vector<1x32xf32>
    %415 = arith.maximumf %413, %414 : vector<1x32xf32>
    %c40 = arith.constant 40 : index
    %c0_150 = arith.constant 0 : index
    %416 = vector.load %arg5[%c40, %c0_150] : memref<48x128xf32, #tpu.memory_space<vmem>>, vector<1x32xf32>
    %c41 = arith.constant 41 : index
    %c0_151 = arith.constant 0 : index
    %417 = vector.load %arg5[%c41, %c0_151] : memref<48x128xf32, #tpu.memory_space<vmem>>, vector<1x32xf32>
    %cst_152 = arith.constant dense<0.000000e+00> : vector<1xf32>
    %418 = vector.multi_reduction <add>, %415, %cst_152 [1] : vector<1x32xf32> to vector<1xf32>
    %419 = vector.shape_cast %418 : vector<1xf32> to vector<1x1xf32>
    %cst_153 = arith.constant 3.200000e+01 : f32
    %420 = vector.broadcast %cst_153 : f32 to vector<1x1xf32>
    %421 = arith.divf %419, %420 : vector<1x1xf32>
    %422 = vector.broadcast %421 : vector<1x1xf32> to vector<1x32xf32>
    %423 = arith.subf %415, %422 : vector<1x32xf32>
    %424 = arith.mulf %423, %423 : vector<1x32xf32>
    %cst_154 = arith.constant dense<0.000000e+00> : vector<1xf32>
    %425 = vector.multi_reduction <add>, %424, %cst_154 [1] : vector<1x32xf32> to vector<1xf32>
    %426 = vector.shape_cast %425 : vector<1xf32> to vector<1x1xf32>
    %cst_155 = arith.constant 3.200000e+01 : f32
    %427 = vector.broadcast %cst_155 : f32 to vector<1x1xf32>
    %428 = arith.divf %426, %427 : vector<1x1xf32>
    %429 = vector.broadcast %421 : vector<1x1xf32> to vector<1x32xf32>
    %430 = arith.subf %415, %429 : vector<1x32xf32>
    %cst_156 = arith.constant 9.99999974E-6 : f32
    %431 = vector.broadcast %cst_156 : f32 to vector<1x1xf32>
    %432 = arith.addf %428, %431 : vector<1x1xf32>
    %433 = math.rsqrt %432 : vector<1x1xf32>
    %434 = vector.broadcast %433 : vector<1x1xf32> to vector<1x32xf32>
    %435 = arith.mulf %430, %434 : vector<1x32xf32>
    %436 = arith.mulf %435, %416 : vector<1x32xf32>
    %437 = arith.addf %436, %417 : vector<1x32xf32>
    %c42 = arith.constant 42 : index
    %c0_157 = arith.constant 0 : index
    %438 = vector.load %arg5[%c42, %c0_157] : memref<48x128xf32, #tpu.memory_space<vmem>>, vector<1x32xf32>
    %439 = arith.mulf %437, %438 : vector<1x32xf32>
    %cst_158 = arith.constant dense<0.000000e+00> : vector<1xf32>
    %440 = vector.multi_reduction <add>, %439, %cst_158 [1] : vector<1x32xf32> to vector<1xf32>
    %441 = vector.shape_cast %440 : vector<1xf32> to vector<1x1xf32>
    %c43 = arith.constant 43 : index
    %c0_159 = arith.constant 0 : index
    %442 = vector.load %arg5[%c43, %c0_159] : memref<48x128xf32, #tpu.memory_space<vmem>>, vector<1x1xf32>
    %443 = arith.addf %441, %442 : vector<1x1xf32>
    %444 = tpu.concatenate %381, %443 in 1 : vector<1x32xf32>, vector<1x1xf32> -> vector<1x33xf32>
    %c0_160 = arith.constant 0 : index
    %c0_161 = arith.constant 0 : index
    %c0_162 = arith.constant 0 : index
    %445 = vector.load %arg7[%c0_160, %c0_161, %c0_162] : memref<1x1x33xf32, #tpu.memory_space<vmem>>, vector<1x1x33xf32>
    %446 = vector.shape_cast %445 : vector<1x1x33xf32> to vector<1x33xf32>
    %447 = vector.shape_cast %444 : vector<1x33xf32> to vector<1x1x33xf32>
    tpu.vector_store %arg7[%c0_160, %c0_161, %c0_162], %447 {strides = array<i32>} : memref<1x1x33xf32, #tpu.memory_space<vmem>>, vector<1x1x33xf32>,
    return
  }
  func.func @transform_0(%arg0: i32) -> (i32, i32, i32) {
    %c0_i32 = arith.constant 0 : i32
    %c0_i32_0 = arith.constant 0 : i32
    %c0_i32_1 = arith.constant 0 : i32
    return %arg0, %c0_i32, %c0_i32_0 : i32, i32, i32
  }
  func.func @transform_1(%arg0: i32) -> (i32, i32, i32) {
    %c0_i32 = arith.constant 0 : i32
    %c0_i32_0 = arith.constant 0 : i32
    %c0_i32_1 = arith.constant 0 : i32
    return %arg0, %c0_i32, %c0_i32_0 : i32, i32, i32
  }
  func.func @transform_2(%arg0: i32) -> (i32, i32, i32) {
    %c0_i32 = arith.constant 0 : i32
    %c0_i32_0 = arith.constant 0 : i32
    %c0_i32_1 = arith.constant 0 : i32
    return %arg0, %c0_i32, %c0_i32_0 : i32, i32, i32
  }
  func.func @transform_3(%arg0: i32) -> (i32, i32) {
    %c0_i32 = arith.constant 0 : i32
    %c0_i32_0 = arith.constant 0 : i32
    %c0_i32_1 = arith.constant 0 : i32
    return %c0_i32, %c0_i32_0 : i32, i32
  }
  func.func @transform_4(%arg0: i32) -> (i32, i32) {
    %c0_i32 = arith.constant 0 : i32
    %c0_i32_0 = arith.constant 0 : i32
    %c0_i32_1 = arith.constant 0 : i32
    return %c0_i32, %c0_i32_0 : i32, i32
  }
  func.func @transform_5(%arg0: i32) -> (i32, i32, i32) {
    %c0_i32 = arith.constant 0 : i32
    %c0_i32_0 = arith.constant 0 : i32
    %c0_i32_1 = arith.constant 0 : i32
    return %arg0, %c0_i32, %c0_i32_0 : i32, i32, i32
  }
  func.func @transform_6(%arg0: i32) -> (i32, i32, i32) {
    %c0_i32 = arith.constant 0 : i32
    %c0_i32_0 = arith.constant 0 : i32
    %c0_i32_1 = arith.constant 0 : i32
    return %arg0, %c0_i32, %c0_i32_0 : i32, i32, i32
  }
}

</mosaic_0001>

<bundles_post_ra>
// kernel: flash_transformer_forward.1
= control target key start
LH: loop header
LB: loop body
LE: loop exit
PB: predicated region body
PF: predicated region fallthrough
CT: control target
= control target key end

     0   :  { %12 = vsyncpa [#allocation3], 0  ;;  %s2439_s0 = inlined_call_operand.vmem [shape: f32[2,8,32], index: 0, kind: input, shape index: {}]   ;;  %s2440_s1 = inlined_call_operand.vmem [shape: f32[2,8,1], index: 1, kind: input, shape index: {}]   ;;  %s2441_s2 = inlined_call_operand.vmem [shape: f32[2,1,8], index: 2, kind: input, shape index: {}]   ;;  %s2442_s3 = inlined_call_operand.hbm [shape: f32[480,128], index: 3, kind: input, shape index: {}]   ;;  %s2443_s4 = inlined_call_operand.vmem [shape: f32[48,128], index: 4, kind: input, shape index: {}]   ;;  %s2444_s5 = inlined_call_operand.hbm [shape: f32[2,1,8], index: 5, kind: output, shape index: {0}]   ;;  %s2445_s6 = inlined_call_operand.vmem [shape: f32[2,1,33], index: 6, kind: output, shape index: {1}]  }
   0x1   :  { %13 = vsyncpa [#allocation4], 0 }
   0x2   :  { %15 = vsyncpa [#allocation4 + $0x1], 0  ;;  %s2032_s21 = smov 0   ;;  %s2034_s22 = smov 0  }
   0x3   :  { %s2036_s23 = smov 0   ;;  %s2038_s24 = smov 0  }
   0x4 LB: > { %s2053_s25 = sadd.s32 4294967295, %s1975_s24   ;;  %s1681_s26 = sadd.s32 4294967294, %s1975_s24   ;;  %s1975_s24 = sphi %s2038_s24, %s2463_s24   ;;  %s1971_s23 = sphi %s2036_s23, %s2462_s23   ;;  %s1967_s22 = sphi %s2034_s22, %s2461_s22   ;;  %s1963_s21 = sphi %s2032_s21, %s2460_s21  }
   0x5   : > { %s2057_s27 = sadd.s32 1, %s1975_s24   ;;  %s148_s28 = sadd.s32 1, %s1971_s23 }
   0x6   : > { %s145_s29 = ssub.s32 %s1975_s24, %s2057_s27  ;;  %p158_p0 = scmp.ne.s32.totalorder %s1971_s23, %s1967_s22 }
   0x7   : > { %p146_p1 = scmp.eq.s32.totalorder %s145_s29, 0  ;;  %p159_p2 = scmp.eq.s32.totalorder %s2053_s25, 1 }
   0x8   : > { %p164_p3 = scmp.ne.s32.totalorder %s1967_s22, %s1963_s21  ;;  %p165_p4 = scmp.eq.s32.totalorder %s1681_s26, 1 }
   0x9   : > { %s2068_s30 = scalar_select %p146_p1, %s1971_s23, %s148_s28  }
   0xa   : > { %p2070_p5 = por %p159_p2, %p158_p0  ;;  %p2074_p6 = por %p165_p4, %p164_p3 }
   0xb   : > { %p1682_p7 = scmp.ge.s32.totalorder %s1975_s24, 1  ;;  %p198_p8 = scmp.lt.s32.totalorder %s1975_s24, 3 }
   0xc   : > { %p1744_p9 = scmp.eq.s32.totalorder %s2053_s25, 0  ;;  %s209_s11 = sshll.u32 %s2442_s3, 4  ;;  %s210_s11 = int_to_ptr.hbm [resolvable:$true] %s209_s11 }
   0xd   : > { %p199_p10 = pnand %p1682_p7, %p198_p8  ;;  %s1977_s12 = smov [#allocation2]  }
   0xe   : > { %s211_s13 = sshll.u32 %s1977_s12, 4  ;;  %s1978_s14 = smov 128   ;;  %s212_s13 = int_to_ptr.vmem [resolvable:$true] %s211_s13 }
   0xf   : > { %p1736_p11 = pneg %p199_p10  ;;  %s1979_s15 = smov 8  }
  0x10   : > { %250 = sbr.rel (%p199_p10) target bundleno = 6017 (0x1781), region = 40 }
  0x11   : > { %p1737_p12 = pnand %p1744_p9, %p1736_p11 }
  0x13   : > { %1739 = dma.hbm_to_vmem [thread:$0]  (!%p1737_p12), %s210_s11, 7680, %s212_s13, [#allocation3], %s1978_s14, %s1978_s14, %s1979_s15  }
  0x15   : > { %1954 = dma.done.wait (%p1744_p9), [#allocation3], 7680  }
  0x16   : > { %1956 = vsyncadd (%p1744_p9), [#allocation3], 4294959616  ;;  %p289_p13 = scmp.lt.s32.totalorder %s2053_s25, 1  ;;  %v1980_v0 = vmov 0   ;;  %v357_v3 = vld [vmem:[#allocation2 + $0x18] sm:$0xff]  ;;  %v356_v4 = vld [vmem:[#allocation2 + $0x10] sm:$0xff] }
  0x17   : > { %1799 = vset.pattern.permute.xlu0 %v1980_v0  ;;  %1800 = vset.pattern.permute.xlu2 %v1980_v0  ;;  %v355_v5 = vld [vmem:[#allocation2 + $0x8] sm:$0xff]  ;;  %v354_v6 = vld [vmem:[#allocation2] sm:$0xff]  ;;  %vm306_vm0 = vcmask 261120   ;;  %v1981_v15 = vmov 32.0   ;;  %v425_v40 = vld [vmem:[#allocation2 + $0x38] sm:$0xff]  ;;  %s1983_s26 = smov 96  }
  0x18   : > { %s2092_s16 = scalar_select %p289_p13, %s2053_s25, 1  ;;  %375 = vmatpush.msra.mxu0 %v357_v3  ;;  %v1802_v9 = vld [vmem:[%s2443_s4 + $0x2] ss:$0 sm:$0xff]  ;;  %v1803_v10 = vld [vmem:[%s2443_s4 + $0x3] ss:$0 sm:$0xff]  ;;  %1829 = vrcp.f32 %v1981_v15  ;;  %v424_v41 = vld [vmem:[#allocation2 + $0x30] sm:$0xff]  ;;  %466 = vmatpush.msra.mxu1 %v425_v40 }
  0x19   : > { %v1804_v23 = vld [vmem:[%s2443_s4 + $0x4] ss:$0 sm:$0xff]  ;;  %v423_v42 = vld [vmem:[#allocation2 + $0x28] sm:$0xff]  ;;  %v1805_v58 = vld [vmem:[%s2443_s4] ss:$0 sm:$0xff]  ;;  %s1984_s28 = smov 88  }
  0x1a   : > { %s1687_s17 = sshll.u32 %s2092_s16, 3  ;;  %s299_s29 = scalar_lea.vmem %s2441_s2, %s2092_s16  ;;  %376 = vmatpush.msra.mxu0 %v356_v4  ;;  %467 = vmatpush.msra.mxu1 %v424_v41  ;;  %v422_v44 = vld [vmem:[#allocation2 + $0x20] sm:$0xff]  ;;  %vm477_vm8 = vcmask 64512   ;;  %vm747_vm9 = vcmask 130048   ;;  %vm749_vm10 = vcmask 195584   ;;  %vm829_vm14 = vcmask 523264  }
  0x1b   : > { %s296_s20 = scalar_lea.vmem %s2440_s1, %s1687_s17  ;;  %s292_s11 = scalar_lea.vmem %s2439_s0, %s1687_s17  ;;  %v1806_v61 = vld [vmem:[%s2443_s4 + $0x5] ss:$0 sm:$0xff] }
  0x1c   : > { %v340_v1 = vld [vmem:[%s296_s20] sm:$0xff]  ;;  %377 = vmatpush.msra.mxu0 %v355_v5  ;;  %468 = vmatpush.msra.mxu1 %v423_v42  ;;  %s1982_s20 = smov 104   ;;  %s1985_s9 = smov 120  }
  0x1d   : > { %v341_v2 = vmin.f32 %v340_v1, 512.0  ;;  %v303_v7 = vld [vmem:[%s292_s11] sm:$0xff]  ;;  %s1986_s10 = smov 72   ;;  %s1987_s11 = smov 80  }
  0x1e   : > { %378 = vmatpush.msra.mxu0 %v354_v6  ;;  %v307_v8 = vsel %vm306_vm0, %v303_v7, 0.0  ;;  %v1830_v16 = vpop.eup %1829  ;;  %469 = vmatpush.msra.mxu1 %v422_v44  ;;  %v1807_v1 = vld [vmem:[%s2443_s4 + $0x1] ss:$0 sm:$0xff]  ;;  %v1809_v6 = vld [vmem:[%s2443_s4 + $0x7] ss:$0 sm:$0xff]  ;;  %s1988_s14 = smov 64  }
  0x1f   : > { %345 = vperm.xlu0 %1799, %v341_v2   ;;  %v311_v17 = vmul.f32 32.0, %v1830_v16  ;;  %vm315_vm1 = vweird.f32 %v1830_v16  ;;  %v1808_v2 = vld [vmem:[%s2443_s4 + $0x6] ss:$0 sm:$0xff]  ;;  %s2451_s15 = smov 56   ;;  %s2450_s17 = smov 40  }
  0x20   : > { %s2449_s18 = smov 48   ;;  %s2448_s19 = smov 8  }
  0x21   : > { %v312_v18 = vsub.f32 1.0, %v311_v17  ;;  %s2447_s12 = smov 16   ;;  %s2446_s13 = smov 24  }
  0x23   : > { %v313_v19 = vmul.f32 %v1830_v16, %v312_v18 }
  0x25   : > { %v314_v20 = vadd.f32 %v1830_v16, %v313_v19  ;;  %v2173_v19 = vld [vmem:[%s299_s29] ss:$0 sm:$0xff]  ;;  %s1989_s29 = smov 112  }
  0x27   : > { %v2113_v21 = vsel %vm315_vm1, %v1830_v16, %v314_v20 }
  0x49   : > { %308 = vadd.xlane.f32.xlu0 %v307_v8  ;;  %v1810_v8 = vld [vmem:[%s2443_s4 + $0x8] ss:$0 sm:$0xff] }
  0x91   : > { %v346_v11 = vpop.permute.xlu0 %345 }
  0x92   : > { %v349_v12 = vmul.f32 %v1802_v9, %v346_v11  ;;  %v1811_v11 = vld [vmem:[%s2443_s4 + $0x10] ss:$0 sm:$0xff] }
  0x94   : > { %v352_v13 = vadd.f32 %v1803_v10, %v349_v12 }
  0x96   : > { %v353_v14 = vmax.f32 %v352_v13, 0.0 }
  0x98   : > { %1689 = vmatmul.msk.f32.vlgmr.msra.gmra.mxu0 %vm306_vm0, %v353_v14 }
  0xbc   : > { %v309_v22 = vpop.xlane.xlu0 %308 }
  0xbd   : > { %v317_v24 = vmul.f32 %v2113_v21, %v309_v22 }
  0xbf   : > { %v318_v27 = vsub.f32 %v303_v7, %v317_v24 }
  0xc1   : > { %v319_v29 = vmul.f32 %v318_v27, %v318_v27 }
  0xc3   : > { %v320_v30 = vsel %vm306_vm0, %v319_v29, 0.0 }
 0x115   : > { %v380_v25 = vpop.f32.mrf.mxu0 }
 0x116   : > { %v381_v26 = vadd.f32 %v1804_v23, %v380_v25 }
 0x118   : > { %v385_v28 = vsel %vm306_vm0, %v381_v26, 0.0 }
 0x119   : > { %386 = vadd.xlane.f32.xlu1 %v385_v28 }
 0x121   : > { %321 = vadd.xlane.f32.xlu1 %v320_v30 }
 0x18c   : > { %v387_v31 = vpop.xlane.xlu1 %386 }
 0x18d   : > { %v388_v32 = vmul.f32 %v387_v31, %v2113_v21 }
 0x18f   : > { %v389_v33 = vsub.f32 %v381_v26, %v388_v32 }
 0x191   : > { %v390_v34 = vmul.f32 %v389_v33, %v389_v33 }
 0x193   : > { %v391_v35 = vsel %vm306_vm0, %v390_v34, 0.0 }
 0x194   : > { %392 = vadd.xlane.f32.xlu2 %v391_v35  ;;  %v322_v36 = vpop.xlane.xlu1 %321 }
 0x195   : > { %v323_v37 = vmul.f32 %v322_v36, %v2113_v21 }
 0x197   : > { %v324_v38 = vadd.f32 1e-05, %v323_v37 }
 0x199   : > { %1831 = vrsqrt.f32 %v324_v38  ;;  %vm331_vm2 = vweird.f32 %v324_v38 }
 0x19f   : > { %v1832_v39 = vpop.eup %1831 }
 0x1a0   : > { %v326_v43 = vmul.f32 %v1832_v39, %v324_v38  ;;  %vm332_vm3 = vweird.f32 %v1832_v39 }
 0x1a1   : > { %vm333_vm4 = vmor %vm331_vm2, %vm332_vm3 }
 0x1a2   : > { %v327_v45 = vmul.f32 %v1832_v39, %v326_v43 }
 0x1a4   : > { %v328_v49 = vmul.f32 0.5, %v327_v45 }
 0x1a6   : > { %v329_v50 = vsub.f32 1.5, %v328_v49 }
 0x1a8   : > { %v330_v52 = vmul.f32 %v1832_v39, %v329_v50 }
 0x1aa   : > { %v334_v55 = vsel %vm333_vm4, %v1832_v39, %v330_v52 }
 0x1ab   : > { %v335_v59 = vmul.f32 %v334_v55, %v318_v27 }
 0x1ad   : > { %v337_v63 = vmul.f32 %v1805_v58, %v335_v59 }
 0x1af   : > { %v339_v4 = vadd.f32 %v1807_v1, %v337_v63 }
 0x207   : > { %v393_v46 = vpop.xlane.xlu2 %392 }
 0x208   : > { %v394_v47 = vmul.f32 %v393_v46, %v2113_v21 }
 0x20a   : > { %v395_v48 = vadd.f32 1e-05, %v394_v47 }
 0x20c   : > { %1833 = vrsqrt.f32 %v395_v48  ;;  %vm402_vm6 = vweird.f32 %v395_v48 }
 0x212   : > { %v1834_v51 = vpop.eup %1833 }
 0x213   : > { %v397_v53 = vmul.f32 %v1834_v51, %v395_v48  ;;  %vm403_vm5 = vweird.f32 %v1834_v51 }
 0x214   : > { %vm404_vm7 = vmor %vm402_vm6, %vm403_vm5 }
 0x215   : > { %v398_v54 = vmul.f32 %v1834_v51, %v397_v53 }
 0x217   : > { %v399_v56 = vmul.f32 0.5, %v398_v54 }
 0x219   : > { %v400_v57 = vsub.f32 1.5, %v399_v56 }
 0x21b   : > { %v401_v60 = vmul.f32 %v1834_v51, %v400_v57 }
 0x21d   : > { %v405_v62 = vsel %vm404_vm7, %v1834_v51, %v401_v60 }
 0x21e   : > { %v406_v0 = vmul.f32 %v405_v62, %v389_v33 }
 0x220   : > { %v408_v3 = vmul.f32 %v1806_v61, %v406_v0 }
 0x222   : > { %v410_v5 = vadd.f32 %v1808_v2, %v408_v3 }
 0x224   : > { %v411_v7 = vadd.f32 %v410_v5, %v339_v4 }
 0x226   : > { %v414_v9 = vmul.f32 %v1809_v6, %v411_v7 }
 0x228   : > { %v2143_v10 = vadd.f32 %v1810_v8, %v414_v9 }
 0x22a   : > { %1690 = vmatmul.msk.f32.vlgmr.msra.gmra.mxu1 %vm306_vm0, %v2143_v10 }
 0x2a7   : > { %v471_v12 = vpop.f32.mrf.mxu1 }
 0x2a8   : > { %v2150_v13 = vadd.f32 %v1811_v11, %v471_v12  ;;  %v429_v12 = vld [vmem:[#allocation2 + $0x58] sm:$0xff] }
 0x2aa   : > { %669 = vrot.lane.b32.xlu0 %v2150_v13, %s1982_s20  ;;  %475 = vrot.lane.b32.xlu2 %v2150_v13, %s1983_s26 }
 0x2b2   : > { %541 = vrot.lane.b32.xlu2 %v2150_v13, %s1984_s28 }
 0x2ba   : > { %539 = vrot.lane.b32.xlu2 %v2150_v13, %s1985_s9 }
 0x2c2   : > { %671 = vrot.lane.b32.xlu2 %v2150_v13, %s1986_s10 }
 0x2ca   : > { %606 = vrot.lane.b32.xlu2 %v2150_v13, %s1987_s11 }
 0x304   : > { %v476_v14 = vpop.permute.xlu2 %475 }
 0x305   : > { %1691 = vmatpush.xpose.msk.msra.mxu2 %vm477_vm8, %v476_v14  ;;  %v427_v14 = vld [vmem:[#allocation2 + $0x48] sm:$0xff] }
 0x308   : > { %1692 = vmatmul.msk.f32.vlgmr.msra.gmra.mxu2 %vm477_vm8, %v2150_v13 }
 0x30c   : > { %v542_v15 = vpop.permute.xlu2 %541 }
 0x314   : > { %v540_v16 = vpop.permute.xlu2 %539 }
 0x31c   : > { %v672_v17 = vpop.permute.xlu2 %671  ;;  %v670_v34 = vpop.permute.xlu0 %669 }
 0x324   : > { %v607_v18 = vpop.permute.xlu2 %606 }
 0x325   : > { %1697 = vmatpush.xpose.msk.msrb.mxu0 %vm477_vm8, %v607_v18 }
 0x329   : > { %766 = vmatpush.msra.mxu0 %v429_v12  ;;  %v882_v12 = vld [vmem:[#allocation2 + $0xd0] sm:$0xff] }
 0x38b   : > { %v499_v20 = vpop.f32.mrf.mxu2 }
 0x38c   : > { %v500_v22 = vadd.f32 %v2173_v19, %v499_v20 }
 0x38e   : > { %v502_v23 = vsel %vm477_vm8, %v500_v22, -inf }
 0x38f   : > { %503 = vmax.xlane.f32.xlu1 %v502_v23 }
 0x3a8   : > { %513 = vrot.lane.b32.xlu1 %v2150_v13, %s1988_s14 }
 0x402   : > { %v504_v24 = vpop.xlane.xlu1 %503 }
 0x403   : > { %v505_v25 = vsub.f32 %v500_v22, %v504_v24  ;;  %v1812_v24 = vld [vmem:[%s2443_s4 + $0x11] ss:$0 sm:$0xff] }
 0x405   : > { %v506_v26 = vmul.f32 1.442695, %v505_v25 }
 0x407   : > { %1835 = vpow2.f32 %v506_v26 }
 0x40d   : > { %v1836_v27 = vpop.eup %1835 }
 0x40e   : > { %v508_v28 = vsel %vm477_vm8, %v1836_v27, 0.0 }
 0x40f   : > { %509 = vadd.xlane.f32.xlu1 %v508_v28 }
 0x41a   : > { %v514_v29 = vpop.permute.xlu1 %513 }
 0x41b   : > { %534 = vmatpush.msra.mxu3 %v514_v29 }
 0x41d   : > { %1694 = vmatpush.xpose.msk.msrb.mxu3 %vm477_vm8, %v542_v15  ;;  %v426_v15 = vld [vmem:[#allocation2 + $0x40] sm:$0xff] }
 0x428   : > { %604 = vrot.lane.b32.xlu1 %v2150_v13, %s1989_s29 }
 0x482   : > { %v510_v30 = vpop.xlane.xlu1 %509 }
 0x483   : > { %1837 = vrcp.f32 %v510_v30 }
 0x489   : > { %v1838_v31 = vpop.eup %1837 }
 0x48a   : > { %v512_v32 = vmul.f32 %v1838_v31, %v1836_v27 }
 0x48c   : > { %1693 = vmatmul.msk.f32.vlgmr.msra.gmra.mxu3 %vm477_vm8, %v512_v32 }
 0x48d   : > { %1700 = vmatpush.xpose.msk.msra.mxu3 %vm477_vm8, %v672_v17 }
 0x494   : > { %1695 = vmatmul.msk.f32.vlgmr.msrb.gmra.mxu3 %vm477_vm8, %v540_v16 }
 0x49a   : > { %v605_v33 = vpop.permute.xlu1 %604 }
 0x49b   : > { %1698 = vmatmul.msk.f32.vlgmr.msrb.gmra.mxu0 %vm477_vm8, %v605_v33 }
 0x49c   : > { %1701 = vmatmul.msk.f32.vlgmr.msra.gmra.mxu3 %vm477_vm8, %v670_v34  ;;  %v433_v34 = vld [vmem:[#allocation2 + $0x78] sm:$0xff] }
 0x50f   : > { %v2188_v35 = vpop.f32.mrf.mxu3 }
 0x517   : > { %v564_v36 = vpop.f32.mrf.mxu3 }
 0x518   : > { %v565_v37 = vadd.f32 %v2173_v19, %v564_v36  ;;  %v629_v38 = vpop.f32.mrf.mxu0  ;;  %v431_v36 = vld [vmem:[#allocation2 + $0x68] sm:$0xff] }
 0x519   : > { %v630_v39 = vadd.f32 %v2173_v19, %v629_v38  ;;  %v440_v38 = vld [vmem:[#allocation2 + $0xb0] sm:$0xff] }
 0x51a   : > { %v567_v40 = vsel %vm477_vm8, %v565_v37, -inf }
 0x51b   : > { %568 = vmax.xlane.f32.xlu2 %v567_v40  ;;  %v632_v41 = vsel %vm477_vm8, %v630_v39, -inf }
 0x51c   : > { %633 = vmax.xlane.f32.xlu0 %v632_v41 }
 0x51f   : > { %v694_v42 = vpop.f32.mrf.mxu3 }
 0x520   : > { %v695_v43 = vadd.f32 %v2173_v19, %v694_v42  ;;  %v438_v42 = vld [vmem:[#allocation2 + $0xa0] sm:$0xff] }
 0x522   : > { %v697_v44 = vsel %vm477_vm8, %v695_v43, -inf }
 0x523   : > { %698 = vmax.xlane.f32.xlu1 %v697_v44  ;;  %v437_v44 = vld [vmem:[#allocation2 + $0x98] sm:$0xff] }
 0x530   : > { %578 = vrot.lane.b32.xlu0 %v2150_v13, %s2451_s15 }
 0x58e   : > { %v569_v45 = vpop.xlane.xlu2 %568 }
 0x58f   : > { %v634_v46 = vpop.xlane.xlu0 %633  ;;  %v570_v48 = vsub.f32 %v565_v37, %v569_v45  ;;  %v430_v37 = vld [vmem:[#allocation2 + $0x60] sm:$0xff] }
 0x590   : > { %v635_v47 = vsub.f32 %v630_v39, %v634_v46  ;;  %v439_v39 = vld [vmem:[#allocation2 + $0xa8] sm:$0xff] }
 0x591   : > { %v571_v50 = vmul.f32 1.442695, %v570_v48 }
 0x592   : > { %v636_v49 = vmul.f32 1.442695, %v635_v47 }
 0x594   : > { %1839 = vpow2.f32 %v636_v49 }
 0x595   : > { %1841 = vpow2.f32 %v571_v50 }
 0x596   : > { %v699_v51 = vpop.xlane.xlu1 %698 }
 0x597   : > { %v700_v52 = vsub.f32 %v695_v43, %v699_v51  ;;  %v1813_v51 = vld [vmem:[%s2443_s4 + $0x12] ss:$0 sm:$0xff] }
 0x599   : > { %v701_v53 = vmul.f32 1.442695, %v700_v52 }
 0x59a   : > { %v1840_v54 = vpop.eup %1839 }
 0x59b   : > { %1843 = vpow2.f32 %v701_v53  ;;  %v638_v55 = vsel %vm477_vm8, %v1840_v54, 0.0  ;;  %v1842_v56 = vpop.eup %1841 }
 0x59c   : > { %639 = vadd.xlane.f32.xlu2 %v638_v55  ;;  %v573_v60 = vsel %vm477_vm8, %v1842_v56, 0.0 }
 0x5a1   : > { %v1844_v57 = vpop.eup %1843 }
 0x5a2   : > { %v579_v58 = vpop.permute.xlu0 %578  ;;  %v703_v59 = vsel %vm477_vm8, %v1844_v57, 0.0 }
 0x5a3   : > { %704 = vadd.xlane.f32.xlu1 %v703_v59  ;;  %599 = vmatpush.msrb.mxu2 %v579_v58  ;;  %v435_v58 = vld [vmem:[#allocation2 + $0x88] sm:$0xff]  ;;  %v434_v59 = vld [vmem:[#allocation2 + $0x80] sm:$0xff] }
 0x5a4   : > { %574 = vadd.xlane.f32.xlu2 %v573_v60  ;;  %v1815_v60 = vld [vmem:[%s2443_s4 + $0x14] ss:$0 sm:$0xff] }
 0x5bc   : > { %708 = vrot.lane.b32.xlu1 %v2150_v13, %s2450_s17  ;;  %643 = vrot.lane.b32.xlu2 %v2150_v13, %s2449_s18  ;;  %v428_v13 = vld [vmem:[#allocation2 + $0x50] sm:$0xff] }
 0x5bd   : > { %767 = vmatpush.msra.mxu0 %v428_v13  ;;  %v881_v13 = vld [vmem:[#allocation2 + $0xc8] sm:$0xff] }
 0x5bf   : > { %768 = vmatpush.msra.mxu0 %v427_v14  ;;  %v880_v14 = vld [vmem:[#allocation2 + $0xc0] sm:$0xff] }
 0x5c1   : > { %769 = vmatpush.msra.mxu0 %v426_v15 }
 0x60f   : > { %v640_v61 = vpop.xlane.xlu2 %639 }
 0x610   : > { %1845 = vrcp.f32 %v640_v61 }
 0x616   : > { %v1846_v63 = vpop.eup %1845  ;;  %v705_v4 = vpop.xlane.xlu1 %704 }
 0x617   : > { %v575_v62 = vpop.xlane.xlu2 %574  ;;  %v642_v3 = vmul.f32 %v1846_v63, %v1840_v54  ;;  %v1814_v54 = vld [vmem:[%s2443_s4 + $0x13] ss:$0 sm:$0xff] }
 0x618   : > { %1847 = vrcp.f32 %v575_v62 }
 0x619   : > { %1849 = vrcp.f32 %v705_v4 }
 0x61e   : > { %v1848_v0 = vpop.eup %1847 }
 0x61f   : > { %v644_v1 = vpop.permute.xlu2 %643  ;;  %v577_v2 = vmul.f32 %v1848_v0, %v1842_v56  ;;  %v1850_v5 = vpop.eup %1849  ;;  %v1816_v0 = vld [vmem:[%s2443_s4 + $0x15] ss:$0 sm:$0xff] }
 0x620   : > { %664 = vmatpush.msrb.mxu1 %v644_v1  ;;  %v707_v6 = vmul.f32 %v1850_v5, %v1844_v57  ;;  %v436_v57 = vld [vmem:[#allocation2 + $0x90] sm:$0xff] }
 0x621   : > { %1696 = vmatmul.msk.f32.vlgmr.msrb.gmra.mxu2 %vm477_vm8, %v577_v2  ;;  %1699 = vmatmul.msk.f32.vlgmr.msrb.gmra.mxu1 %vm477_vm8, %v642_v3 }
 0x622   : > { %819 = vmatpush.msra.mxu1 %v433_v34 }
 0x62e   : > { %v709_v7 = vpop.permute.xlu1 %708 }
 0x62f   : > { %729 = vmatpush.msra.mxu2 %v709_v7 }
 0x630   : > { %1702 = vmatmul.msk.f32.vlgmr.msra.gmra.mxu2 %vm477_vm8, %v707_v6 }
 0x69e   : > { %v666_v9 = vpop.f32.mrf.mxu1 }
 0x6a4   : > { %v601_v8 = vpop.f32.mrf.mxu2 }
 0x6a5   : > { %735 = vrot.lane.b32.xlu0 %v601_v8, %s2448_s19 }
 0x6ad   : > { %739 = vrot.lane.b32.xlu0 %v666_v9, %s2447_s12 }
 0x6b3   : > { %v731_v11 = vpop.f32.mrf.mxu2 }
 0x6b4   : > { %743 = vrot.lane.b32.xlu1 %v731_v11, %s2446_s13  ;;  %v883_v11 = vld [vmem:[#allocation2 + $0xd8] sm:$0xff] }
 0x6b5   : > { %924 = vmatpush.msrb.mxu2 %v883_v11 }
 0x6b7   : > { %925 = vmatpush.msrb.mxu2 %v882_v12 }
 0x6b9   : > { %926 = vmatpush.msrb.mxu2 %v881_v13 }
 0x6bb   : > { %927 = vmatpush.msrb.mxu2 %v880_v14 }
 0x717   : > { %v736_v16 = vpop.permute.xlu0 %735 }
 0x718   : > { %v746_v18 = vsel %vm477_vm8, %v2188_v35, %v736_v16  ;;  %v432_v35 = vld [vmem:[#allocation2 + $0x70] sm:$0xff] }
 0x719   : > { %820 = vmatpush.msra.mxu1 %v432_v35 }
 0x71b   : > { %821 = vmatpush.msra.mxu1 %v431_v36 }
 0x71d   : > { %822 = vmatpush.msra.mxu1 %v430_v37 }
 0x71f   : > { %v740_v17 = vpop.permute.xlu0 %739 }
 0x720   : > { %v748_v20 = vsel %vm747_vm9, %v746_v18, %v740_v17 }
 0x726   : > { %v744_v22 = vpop.permute.xlu1 %743 }
 0x727   : > { %v750_v23 = vsel %vm749_vm10, %v748_v20, %v744_v22 }
 0x728   : > { %1703 = vmatmul.msk.f32.vlgmr.msra.gmra.mxu0 %vm306_vm0, %v750_v23 }
 0x7a5   : > { %v771_v25 = vpop.f32.mrf.mxu0 }
 0x7a6   : > { %v774_v26 = vadd.f32 %v771_v25, %v2143_v10  ;;  %v441_v10 = vld [vmem:[#allocation2 + $0xb8] sm:$0xff] }
 0x7a7   : > { %841 = vmatpush.msrb.mxu3 %v441_v10 }
 0x7a8   : > { %v776_v27 = vadd.f32 %v1812_v24, %v774_v26  ;;  %v1817_v26 = vld [vmem:[%s2443_s4 + $0x16] ss:$0 sm:$0xff] }
 0x7a9   : > { %842 = vmatpush.msrb.mxu3 %v440_v38 }
 0x7aa   : > { %v777_v28 = vsel %vm306_vm0, %v776_v27, 0.0 }
 0x7ab   : > { %778 = vadd.xlane.f32.xlu2 %v777_v28  ;;  %843 = vmatpush.msrb.mxu3 %v439_v39 }
 0x7ad   : > { %844 = vmatpush.msrb.mxu3 %v438_v42 }
 0x7af   : > { %845 = vmatpush.msrb.mxu3 %v437_v44 }
 0x7b1   : > { %846 = vmatpush.msrb.mxu3 %v436_v57 }
 0x7b3   : > { %847 = vmatpush.msrb.mxu3 %v435_v58 }
 0x7b5   : > { %848 = vmatpush.msrb.mxu3 %v434_v59 }
 0x81e   : > { %v779_v29 = vpop.xlane.xlu2 %778 }
 0x81f   : > { %v780_v30 = vmul.f32 %v779_v29, %v2113_v21  ;;  %v1818_v29 = vld [vmem:[%s2443_s4 + $0x17] ss:$0 sm:$0xff] }
 0x821   : > { %v781_v31 = vsub.f32 %v776_v27, %v780_v30 }
 0x823   : > { %v782_v32 = vmul.f32 %v781_v31, %v781_v31 }
 0x825   : > { %v783_v33 = vsel %vm306_vm0, %v782_v32, 0.0  ;;  %v1819_v32 = vld [vmem:[%s2443_s4 + $0x18] ss:$0 sm:$0xff] }
 0x826   : > { %784 = vadd.xlane.f32.xlu0 %v783_v33 }
 0x899   : > { %v785_v40 = vpop.xlane.xlu0 %784 }
 0x89a   : > { %v786_v41 = vmul.f32 %v785_v40, %v2113_v21 }
 0x89c   : > { %v787_v43 = vadd.f32 1e-05, %v786_v41 }
 0x89e   : > { %1851 = vrsqrt.f32 %v787_v43  ;;  %vm794_vm12 = vweird.f32 %v787_v43 }
 0x8a4   : > { %v1852_v45 = vpop.eup %1851 }
 0x8a5   : > { %v789_v46 = vmul.f32 %v1852_v45, %v787_v43  ;;  %vm795_vm11 = vweird.f32 %v1852_v45 }
 0x8a6   : > { %vm796_vm13 = vmor %vm794_vm12, %vm795_vm11 }
 0x8a7   : > { %v790_v47 = vmul.f32 %v1852_v45, %v789_v46 }
 0x8a9   : > { %v791_v48 = vmul.f32 0.5, %v790_v47 }
 0x8ab   : > { %v792_v49 = vsub.f32 1.5, %v791_v48 }
 0x8ad   : > { %v793_v50 = vmul.f32 %v1852_v45, %v792_v49 }
 0x8af   : > { %v797_v52 = vsel %vm796_vm13, %v1852_v45, %v793_v50 }
 0x8b0   : > { %v798_v53 = vmul.f32 %v797_v52, %v781_v31 }
 0x8b2   : > { %v800_v55 = vmul.f32 %v1813_v51, %v798_v53 }
 0x8b4   : > { %v802_v56 = vadd.f32 %v1814_v54, %v800_v55 }
 0x8b6   : > { %1704 = vmatmul.msk.f32.vlgmr.msra.gmra.mxu1 %vm306_vm0, %v802_v56 }
 0x933   : > { %v824_v61 = vpop.f32.mrf.mxu1 }
 0x934   : > { %v825_v62 = vadd.f32 %v1815_v60, %v824_v61 }
 0x936   : > { %v827_v63 = vmax.f32 %v825_v62, 0.0 }
 0x938   : > { %1705 = vmatmul.msk.f32.vlgmr.msrb.gmra.mxu3 %vm829_vm14, %v827_v63 }
 0x9bb   : > { %v850_v1 = vpop.f32.mrf.mxu3 }
 0x9bc   : > { %v851_v2 = vadd.f32 %v1816_v0, %v850_v1 }
 0x9be   : > { %v853_v3 = vadd.f32 %v851_v2, %v802_v56 }
 0x9c0   : > { %v854_v4 = vsel %vm306_vm0, %v853_v3, 0.0 }
 0x9c1   : > { %855 = vadd.xlane.f32.xlu1 %v854_v4 }
 0xa34   : > { %v856_v5 = vpop.xlane.xlu1 %855 }
 0xa35   : > { %v857_v6 = vmul.f32 %v856_v5, %v2113_v21 }
 0xa37   : > { %v858_v7 = vsub.f32 %v853_v3, %v857_v6 }
 0xa39   : > { %v859_v8 = vmul.f32 %v858_v7, %v858_v7 }
 0xa3b   : > { %v860_v9 = vsel %vm306_vm0, %v859_v8, 0.0 }
 0xa3c   : > { %861 = vadd.xlane.f32.xlu2 %v860_v9 }
 0xaaf   : > { %v862_v15 = vpop.xlane.xlu2 %861 }
 0xab0   : > { %v863_v16 = vmul.f32 %v862_v15, %v2113_v21 }
 0xab2   : > { %v864_v17 = vadd.f32 1e-05, %v863_v16 }
 0xab4   : > { %1853 = vrsqrt.f32 %v864_v17  ;;  %vm871_vm1 = vweird.f32 %v864_v17 }
 0xaba   : > { %v1854_v18 = vpop.eup %1853 }
 0xabb   : > { %v866_v20 = vmul.f32 %v1854_v18, %v864_v17  ;;  %vm872_vm15 = vweird.f32 %v1854_v18 }
 0xabc   : > { %vm873_vm2 = vmor %vm871_vm1, %vm872_vm15 }
 0xabd   : > { %v867_v22 = vmul.f32 %v1854_v18, %v866_v20 }
 0xabf   : > { %v868_v23 = vmul.f32 0.5, %v867_v22 }
 0xac1   : > { %v869_v24 = vsub.f32 1.5, %v868_v23 }
 0xac3   : > { %v870_v25 = vmul.f32 %v1854_v18, %v869_v24 }
 0xac5   : > { %v874_v27 = vsel %vm873_vm2, %v1854_v18, %v870_v25 }
 0xac6   : > { %v875_v28 = vmul.f32 %v874_v27, %v858_v7 }
 0xac8   : > { %v877_v30 = vmul.f32 %v1817_v26, %v875_v28 }
 0xaca   : > { %v2248_v31 = vadd.f32 %v1818_v29, %v877_v30 }
 0xacc   : > { %1706 = vmatmul.msk.f32.vlgmr.msrb.gmra.mxu2 %vm306_vm0, %v2248_v31 }
 0xb4f   : > { %v929_v33 = vpop.f32.mrf.mxu2 }
 0xb50   : > { %v2255_v34 = vadd.f32 %v1819_v32, %v929_v33  ;;  %v887_v32 = vld [vmem:[#allocation2 + $0xf8] sm:$0xff]  ;;  %v886_v33 = vld [vmem:[#allocation2 + $0xf0] sm:$0xff] }
 0xb52   : > { %970 = vrot.lane.b32.xlu2 %v2255_v34, %s1988_s14  ;;  %933 = vrot.lane.b32.xlu0 %v2255_v34, %s1983_s26  ;;  %s2455_s26 = smov 40   ;;  %s1567_s14 = scalar_lea.hbm %s2444_s5, %s2053_s25 }
 0xb53   : > { %s1571_s17 = sshll.u32 %s1567_s14, 4  ;;  %s1572_s17 = int_to_ptr.hbm [resolvable:$true] %s1571_s17 }
 0xb54   : > { %s1923_s12 = sshra.s32 %s1572_s17, 4  ;;  %s1924_s12 = int_to_ptr.hbm [resolvable:$true] %s1923_s12 }
 0xb55   : > { %s1925_s18 = scalar_lea.hbm %s1924_s12, 1  ;;  %p1930_p3 = scmp.lt.s32.totalorder %s1924_s12, %s2444_s5 }
 0xb56   : > { %p1926_p0 = scmp.ne.s32.totalorder %s1924_s12, %s1925_s18 }
 0xb58   : > { %p1927_p1 = pnand %p1926_p0, %p2070_p5 }
 0xb5a   : > { %996 = vrot.lane.b32.xlu0 %v2255_v34, %s1985_s9  ;;  %s2457_s9 = smov 8   ;;  %p1928_p2 = pneg %p1927_p1 }
 0xb62   : > { %1063 = vrot.lane.b32.xlu0 %v2255_v34, %s1987_s11  ;;  %s2459_s11 = smov 24  }
 0xb6a   : > { %1061 = vrot.lane.b32.xlu0 %v2255_v34, %s1989_s29 }
 0xbac   : > { %v971_v35 = vpop.permute.xlu2 %970 }
 0xbad   : > { %991 = vmatpush.msrb.mxu1 %v971_v35  ;;  %v884_v35 = vld [vmem:[#allocation2 + $0xe0] sm:$0xff] }
 0xbc4   : > { %v934_v36 = vpop.permute.xlu0 %933 }
 0xbc5   : > { %1707 = vmatpush.xpose.msk.msrb.mxu0 %vm477_vm8, %v934_v36 }
 0xbc8   : > { %1708 = vmatmul.msk.f32.vlgmr.msrb.gmra.mxu0 %vm477_vm8, %v2255_v34 }
 0xbcc   : > { %v997_v37 = vpop.permute.xlu0 %996 }
 0xbd4   : > { %v1064_v10 = vpop.permute.xlu0 %1063 }
 0xbd5   : > { %1713 = vmatpush.xpose.msk.msra.mxu1 %vm477_vm8, %v1064_v10 }
 0xbdc   : > { %v1062_v52 = vpop.permute.xlu0 %1061 }
 0xc45   : > { %v956_v38 = vpop.f32.mrf.mxu0 }
 0xc46   : > { %v957_v39 = vadd.f32 %v2173_v19, %v956_v38 }
 0xc48   : > { %v959_v40 = vsel %vm477_vm8, %v957_v39, -inf }
 0xc49   : > { %960 = vmax.xlane.f32.xlu1 %v959_v40 }
 0xc62   : > { %998 = vrot.lane.b32.xlu1 %v2255_v34, %s1984_s28  ;;  %s2456_s28 = smov 48  }
 0xc6a   : > { %1128 = vrot.lane.b32.xlu1 %v2255_v34, %s1986_s10  ;;  %s2458_s10 = smov 16  }
 0xcbc   : > { %v961_v41 = vpop.xlane.xlu1 %960 }
 0xcbd   : > { %v962_v42 = vsub.f32 %v957_v39, %v961_v41  ;;  %v1820_v41 = vld [vmem:[%s2443_s4 + $0x19] ss:$0 sm:$0xff] }
 0xcbf   : > { %v963_v43 = vmul.f32 1.442695, %v962_v42 }
 0xcc1   : > { %1855 = vpow2.f32 %v963_v43 }
 0xcc7   : > { %v1856_v44 = vpop.eup %1855 }
 0xcc8   : > { %v965_v45 = vsel %vm477_vm8, %v1856_v44, 0.0 }
 0xcc9   : > { %966 = vadd.xlane.f32.xlu2 %v965_v45 }
 0xcd4   : > { %v999_v46 = vpop.permute.xlu1 %998 }
 0xcd5   : > { %1710 = vmatpush.xpose.msk.msra.mxu2 %vm477_vm8, %v999_v46 }
 0xcd8   : > { %1711 = vmatmul.msk.f32.vlgmr.msra.gmra.mxu2 %vm477_vm8, %v997_v37 }
 0xcdc   : > { %v1129_v47 = vpop.permute.xlu1 %1128 }
 0xcdd   : > { %1716 = vmatpush.xpose.msk.msrb.mxu2 %vm477_vm8, %v1129_v47 }
 0xce1   : > { %1126 = vrot.lane.b32.xlu2 %v2255_v34, %s1982_s20  ;;  %s2454_s20 = smov 56  }
 0xd3c   : > { %v967_v48 = vpop.xlane.xlu2 %966 }
 0xd3d   : > { %1857 = vrcp.f32 %v967_v48 }
 0xd43   : > { %v1858_v49 = vpop.eup %1857 }
 0xd44   : > { %v969_v50 = vmul.f32 %v1858_v49, %v1856_v44  ;;  %v1127_v51 = vpop.permute.xlu2 %1126 }
 0xd45   : > { %1717 = vmatmul.msk.f32.vlgmr.msrb.gmra.mxu2 %vm477_vm8, %v1127_v51  ;;  %v891_v51 = vld [vmem:[#allocation2 + $0x118] sm:$0xff] }
 0xd46   : > { %1709 = vmatmul.msk.f32.vlgmr.msrb.gmra.mxu1 %vm477_vm8, %v969_v50 }
 0xd47   : > { %1221 = vmatpush.msrb.mxu1 %v887_v32  ;;  %v1335_v32 = vld [vmem:[#allocation2 + $0x168] sm:$0xff] }
 0xd49   : > { %1222 = vmatpush.msrb.mxu1 %v886_v33  ;;  %v1334_v33 = vld [vmem:[#allocation2 + $0x160] sm:$0xff] }
 0xd4e   : > { %1714 = vmatmul.msk.f32.vlgmr.msra.gmra.mxu1 %vm477_vm8, %v1062_v52  ;;  %v890_v52 = vld [vmem:[#allocation2 + $0x110] sm:$0xff] }
 0xd5b   : > { %v1021_v53 = vpop.f32.mrf.mxu2 }
 0xd5c   : > { %v1022_v54 = vadd.f32 %v2173_v19, %v1021_v53  ;;  %v889_v53 = vld [vmem:[#allocation2 + $0x108] sm:$0xff] }
 0xd5e   : > { %v1024_v55 = vsel %vm477_vm8, %v1022_v54, -inf }
 0xd5f   : > { %1025 = vmax.xlane.f32.xlu1 %v1024_v55  ;;  %v898_v55 = vld [vmem:[#allocation2 + $0x150] sm:$0xff] }
 0xdc3   : > { %v2288_v56 = vpop.f32.mrf.mxu1 }
 0xdc8   : > { %v1151_v57 = vpop.f32.mrf.mxu2 }
 0xdc9   : > { %v1152_v58 = vadd.f32 %v2173_v19, %v1151_v57 }
 0xdcb   : > { %v1086_v59 = vpop.f32.mrf.mxu1  ;;  %v1154_v60 = vsel %vm477_vm8, %v1152_v58, -inf }
 0xdcc   : > { %v1087_v61 = vadd.f32 %v2173_v19, %v1086_v59  ;;  %1155 = vmax.xlane.f32.xlu2 %v1154_v60  ;;  %v896_v59 = vld [vmem:[#allocation2 + $0x140] sm:$0xff] }
 0xdce   : > { %v1089_v62 = vsel %vm477_vm8, %v1087_v61, -inf }
 0xdcf   : > { %1090 = vmax.xlane.f32.xlu0 %v1089_v62 }
 0xdd2   : > { %v1026_v63 = vpop.xlane.xlu1 %1025 }
 0xdd3   : > { %v1027_v0 = vsub.f32 %v1022_v54, %v1026_v63  ;;  %v888_v54 = vld [vmem:[#allocation2 + $0x100] sm:$0xff] }
 0xdd5   : > { %v1028_v1 = vmul.f32 1.442695, %v1027_v0 }
 0xdd7   : > { %1859 = vpow2.f32 %v1028_v1 }
 0xddd   : > { %v1860_v2 = vpop.eup %1859 }
 0xdde   : > { %v1030_v3 = vsel %vm477_vm8, %v1860_v2, 0.0 }
 0xddf   : > { %1031 = vadd.xlane.f32.xlu1 %v1030_v3 }
 0xdf8   : > { %1035 = vrot.lane.b32.xlu1 %v2255_v34, %s2454_s20  ;;  %s1929_s20 = scalar_lea.hbm %s2444_s5, 2 }
 0xdf9   : > { %p1931_p4 = scmp.lt.s32.totalorder %s1929_s20, %s1925_s18 }
 0xdfb   : > { %p1932_p7 = por %p1931_p4, %p1930_p3 }
 0xdfd   : > { %p1933_p8 = pnand %p1932_p7, %p1928_p2 }
 0xe3f   : > { %v1156_v4 = vpop.xlane.xlu2 %1155 }
 0xe40   : > { %v1157_v5 = vsub.f32 %v1152_v58, %v1156_v4  ;;  %v1821_v4 = vld [vmem:[%s2443_s4 + $0x1a] ss:$0 sm:$0xff] }
 0xe42   : > { %v1158_v6 = vmul.f32 1.442695, %v1157_v5  ;;  %v1091_v7 = vpop.xlane.xlu0 %1090 }
 0xe43   : > { %v1092_v19 = vsub.f32 %v1087_v61, %v1091_v7  ;;  %v895_v61 = vld [vmem:[#allocation2 + $0x138] sm:$0xff] }
 0xe44   : > { %1861 = vpow2.f32 %v1158_v6  ;;  %v1822_v7 = vld [vmem:[%s2443_s4 + $0x1b] ss:$0 sm:$0xff] }
 0xe45   : > { %v1093_v8 = vmul.f32 1.442695, %v1092_v19 }
 0xe47   : > { %1863 = vpow2.f32 %v1093_v8 }
 0xe4a   : > { %v1862_v9 = vpop.eup %1861 }
 0xe4b   : > { %v1160_v11 = vsel %vm477_vm8, %v1862_v9, 0.0 }
 0xe4c   : > { %1161 = vadd.xlane.f32.xlu0 %v1160_v11  ;;  %v893_v11 = vld [vmem:[#allocation2 + $0x128] sm:$0xff] }
 0xe4d   : > { %v1864_v12 = vpop.eup %1863 }
 0xe4e   : > { %v1095_v13 = vsel %vm477_vm8, %v1864_v12, 0.0 }
 0xe4f   : > { %1096 = vadd.xlane.f32.xlu2 %v1095_v13  ;;  %v1823_v13 = vld [vmem:[%s2443_s4 + $0x1c] ss:$0 sm:$0xff] }
 0xe52   : > { %v1032_v14 = vpop.xlane.xlu1 %1031 }
 0xe53   : > { %1865 = vrcp.f32 %v1032_v14 }
 0xe59   : > { %v1866_v15 = vpop.eup %1865 }
 0xe5a   : > { %v1034_v16 = vmul.f32 %v1866_v15, %v1860_v2 }
 0xe60   : > { %1165 = vrot.lane.b32.xlu0 %v2255_v34, %s2455_s26 }
 0xe67   : > { %1100 = vrot.lane.b32.xlu2 %v2255_v34, %s2456_s28  ;;  %v885_v34 = vld [vmem:[#allocation2 + $0xe8] sm:$0xff]  ;;  %s1996_s28 = smov 32  }
 0xe68   : > { %1223 = vmatpush.msrb.mxu1 %v885_v34  ;;  %v1436_v34 = vld [vmem:[#allocation2 + $0x1b8] sm:$0xff] }
 0xe6a   : > { %v1036_v17 = vpop.permute.xlu1 %1035  ;;  %1224 = vmatpush.msrb.mxu1 %v884_v35  ;;  %v1435_v35 = vld [vmem:[#allocation2 + $0x1b0] sm:$0xff] }
 0xe6b   : > { %1056 = vmatpush.msra.mxu0 %v1036_v17  ;;  %v1824_v17 = vld [vmem:[%s2443_s4 + $0x1d] ss:$0 sm:$0xff] }
 0xe6c   : > { %1712 = vmatmul.msk.f32.vlgmr.msra.gmra.mxu0 %vm477_vm8, %v1034_v16 }
 0xebf   : > { %v1162_v20 = vpop.xlane.xlu0 %1161 }
 0xec2   : > { %v1097_v18 = vpop.xlane.xlu2 %1096 }
 0xec3   : > { %1867 = vrcp.f32 %v1097_v18 }
 0xec4   : > { %1869 = vrcp.f32 %v1162_v20 }
 0xec9   : > { %v1868_v22 = vpop.eup %1867 }
 0xeca   : > { %v1099_v23 = vmul.f32 %v1868_v22, %v1864_v12  ;;  %v1101_v24 = vpop.permute.xlu2 %1100  ;;  %v1870_v25 = vpop.eup %1869  ;;  %v892_v12 = vld [vmem:[#allocation2 + $0x120] sm:$0xff] }
 0xecb   : > { %1121 = vmatpush.msra.mxu3 %v1101_v24  ;;  %v1164_v26 = vmul.f32 %v1870_v25, %v1862_v9  ;;  %v894_v9 = vld [vmem:[#allocation2 + $0x130] sm:$0xff] }
 0xecc   : > { %1715 = vmatmul.msk.f32.vlgmr.msra.gmra.mxu3 %vm477_vm8, %v1099_v23 }
 0xecd   : > { %1274 = vmatpush.msrb.mxu3 %v891_v51 }
 0xecf   : > { %1275 = vmatpush.msrb.mxu3 %v890_v52 }
 0xed1   : > { %1276 = vmatpush.msrb.mxu3 %v889_v53  ;;  %v1368_v53 = vld [vmem:[#allocation2 + $0x190] sm:$0xff] }
 0xed2   : > { %v1166_v27 = vpop.permute.xlu0 %1165 }
 0xed3   : > { %1186 = vmatpush.msrb.mxu0 %v1166_v27  ;;  %1277 = vmatpush.msrb.mxu3 %v888_v54  ;;  %v1367_v54 = vld [vmem:[#allocation2 + $0x188] sm:$0xff] }
 0xed4   : > { %1718 = vmatmul.msk.f32.vlgmr.msrb.gmra.mxu0 %vm477_vm8, %v1164_v26 }
 0xee9   : > { %v1058_v28 = vpop.f32.mrf.mxu0 }
 0xeea   : > { %1192 = vrot.lane.b32.xlu0 %v1058_v28, %s2457_s9  ;;  %s282_s9 = sand.u32 1, %s1967_s22  }
 0xeeb   : > { %s283_s29 = scalar_lea.vmem [#allocation5], %s282_s9  ;;  %s1556_s13 = scalar_lea.sflag [#allocation4], %s282_s9 }
 0xeec   : > { %s1569_s15 = sshll.u32 %s283_s29, 4  ;;  %s1570_s15 = int_to_ptr.vmem [resolvable:$true] %s1569_s15 }
 0xf4f   : > { %v1123_v29 = vpop.f32.mrf.mxu3 }
 0xf50   : > { %1196 = vrot.lane.b32.xlu1 %v1123_v29, %s2458_s10  ;;  %v1337_v29 = vld [vmem:[#allocation2 + $0x178] sm:$0xff] }
 0xf51   : > { %v1188_v30 = vpop.f32.mrf.mxu0  ;;  %1355 = vmatpush.msra.mxu0 %v1337_v29  ;;  %v1460_v29 = vld [vmem:[%s2443_s4 + $0x26] sm:$0x1] }
 0xf52   : > { %1200 = vrot.lane.b32.xlu2 %v1188_v30, %s2459_s11  ;;  %v1336_v30 = vld [vmem:[#allocation2 + $0x170] sm:$0xff] }
 0xf53   : > { %1356 = vmatpush.msra.mxu0 %v1336_v30 }
 0xf55   : > { %1357 = vmatpush.msra.mxu0 %v1335_v32 }
 0xf57   : > { %1358 = vmatpush.msra.mxu0 %v1334_v33  ;;  %v1490_v33 = vld [vmem:[%s2443_s4 + $0x27] sm:$0x1] }
 0xf59   : > { %1450 = vmatpush.msrb.mxu0 %v1436_v34 }
 0xf5b   : > { %1451 = vmatpush.msrb.mxu0 %v1435_v35 }
 0xf5c   : > { %v1193_v36 = vpop.permute.xlu0 %1192 }
 0xf5d   : > { %v1203_v37 = vsel %vm477_vm8, %v2288_v56, %v1193_v36  ;;  %v897_v56 = vld [vmem:[#allocation2 + $0x148] sm:$0xff] }
 0xf5e   : > { %v1434_v36 = vld [vmem:[#allocation2 + $0x1a8] sm:$0xff] }
 0xf5f   : > { %1452 = vmatpush.msrb.mxu0 %v1434_v36 }
 0xfac   : > { %v1201_v38 = vpop.permute.xlu2 %1200 }
 0xfc2   : > { %v1197_v10 = vpop.permute.xlu1 %1196 }
 0xfc3   : > { %v1204_v39 = vsel %vm747_vm9, %v1203_v37, %v1197_v10 }
 0xfc4   : > { %v1205_v40 = vsel %vm749_vm10, %v1204_v39, %v1201_v38  ;;  %v1433_v38 = vld [vmem:[#allocation2 + $0x1a0] sm:$0xff]  ;;  %vm1461_vm10 = vcmask 253952  }
 0xfc5   : > { %1719 = vmatmul.msk.f32.vlgmr.msrb.gmra.mxu1 %vm306_vm0, %v1205_v40  ;;  %1453 = vmatpush.msrb.mxu0 %v1433_v38  ;;  %v1369_v40 = vld [vmem:[#allocation2 + $0x198] sm:$0xff] }
 0xfc6   : > { %1387 = vmatpush.msra.mxu1 %v1369_v40 }
 0xfc8   : > { %1388 = vmatpush.msra.mxu1 %v1368_v53 }
 0xfca   : > { %1389 = vmatpush.msra.mxu1 %v1367_v54  ;;  %v1515_v54 = vld [vmem:[%s2443_s4 + $0x28] sm:$0x1] }
0x1042   : > { %v1226_v42 = vpop.f32.mrf.mxu1 }
0x1043   : > { %v1229_v43 = vadd.f32 %v1226_v42, %v2248_v31  ;;  %v899_v31 = vld [vmem:[#allocation2 + $0x158] sm:$0xff] }
0x1044   : > { %1295 = vmatpush.msra.mxu2 %v899_v31  ;;  %v1366_v31 = vld [vmem:[#allocation2 + $0x180] sm:$0xff] }
0x1045   : > { %v1231_v44 = vadd.f32 %v1820_v41, %v1229_v43  ;;  %1390 = vmatpush.msra.mxu1 %v1366_v31  ;;  %v1516_v31 = vld [vmem:[%s2443_s4 + $0x29] sm:$0x1] }
0x1046   : > { %1296 = vmatpush.msra.mxu2 %v898_v55  ;;  %v1827_v55 = vld [vmem:[%s2443_s4 + $0x20] ss:$0 sm:$0xff] }
0x1047   : > { %v1232_v45 = vsel %vm306_vm0, %v1231_v44, 0.0 }
0x1048   : > { %1233 = vadd.xlane.f32.xlu0 %v1232_v45  ;;  %1297 = vmatpush.msra.mxu2 %v897_v56 }
0x104a   : > { %1298 = vmatpush.msra.mxu2 %v896_v59 }
0x104c   : > { %1299 = vmatpush.msra.mxu2 %v895_v61 }
0x104e   : > { %1300 = vmatpush.msra.mxu2 %v894_v9 }
0x1050   : > { %1301 = vmatpush.msra.mxu2 %v893_v11  ;;  %v1489_v11 = vld [vmem:[#allocation2 + $0x1d8] sm:$0xff] }
0x1051   : > { %1506 = vmatpush.msrb.mxu1 %v1489_v11 }
0x1052   : > { %1302 = vmatpush.msra.mxu2 %v892_v12  ;;  %v1488_v12 = vld [vmem:[#allocation2 + $0x1d0] sm:$0xff] }
0x1053   : > { %1507 = vmatpush.msrb.mxu1 %v1488_v12 }
0x10bb   : > { %v1234_v46 = vpop.xlane.xlu0 %1233 }
0x10bc   : > { %v1235_v47 = vmul.f32 %v1234_v46, %v2113_v21 }
0x10be   : > { %v1236_v48 = vsub.f32 %v1231_v44, %v1235_v47  ;;  %v1825_v47 = vld [vmem:[%s2443_s4 + $0x1e] ss:$0 sm:$0xff] }
0x10c0   : > { %v1237_v49 = vmul.f32 %v1236_v48, %v1236_v48 }
0x10c2   : > { %v1238_v50 = vsel %vm306_vm0, %v1237_v49, 0.0 }
0x10c3   : > { %1239 = vadd.xlane.f32.xlu1 %v1238_v50  ;;  %v1826_v50 = vld [vmem:[%s2443_s4 + $0x1f] ss:$0 sm:$0xff] }
0x1136   : > { %v1240_v57 = vpop.xlane.xlu1 %1239 }
0x1137   : > { %v1241_v58 = vmul.f32 %v1240_v57, %v2113_v21 }
0x1139   : > { %v1242_v60 = vadd.f32 1e-05, %v1241_v58 }
0x113b   : > { %1871 = vrsqrt.f32 %v1242_v60  ;;  %vm1249_vm4 = vweird.f32 %v1242_v60 }
0x1141   : > { %v1872_v62 = vpop.eup %1871 }
0x1142   : > { %v1244_v63 = vmul.f32 %v1872_v62, %v1242_v60  ;;  %vm1250_vm3 = vweird.f32 %v1872_v62  ;;  %v1437_v60 = vld [vmem:[%s2443_s4 + $0x24] sm:$0x1] }
0x1143   : > { %vm1251_vm5 = vmor %vm1249_vm4, %vm1250_vm3  ;;  %vm1431_vm3 = vcmask 57344  }
0x1144   : > { %v1245_v0 = vmul.f32 %v1872_v62, %v1244_v63 }
0x1146   : > { %v1246_v1 = vmul.f32 0.5, %v1245_v0 }
0x1148   : > { %v1247_v2 = vsub.f32 1.5, %v1246_v1  ;;  %v1828_v1 = vld [vmem:[%s2443_s4 + $0x21] ss:$0 sm:$0xff] }
0x114a   : > { %v1248_v3 = vmul.f32 %v1872_v62, %v1247_v2 }
0x114c   : > { %v1252_v5 = vsel %vm1251_vm5, %v1872_v62, %v1248_v3 }
0x114d   : > { %v1253_v6 = vmul.f32 %v1252_v5, %v1236_v48 }
0x114f   : > { %v1255_v19 = vmul.f32 %v1821_v4, %v1253_v6 }
0x1151   : > { %v1257_v8 = vadd.f32 %v1822_v7, %v1255_v19 }
0x1153   : > { %1720 = vmatmul.msk.f32.vlgmr.msrb.gmra.mxu3 %vm306_vm0, %v1257_v8 }
0x11d6   : > { %v1279_v14 = vpop.f32.mrf.mxu3 }
0x11d7   : > { %v1280_v15 = vadd.f32 %v1823_v13, %v1279_v14  ;;  %v1487_v13 = vld [vmem:[#allocation2 + $0x1c8] sm:$0xff]  ;;  %v1486_v14 = vld [vmem:[#allocation2 + $0x1c0] sm:$0xff] }
0x11d8   : > { %1508 = vmatpush.msrb.mxu1 %v1487_v13 }
0x11d9   : > { %v1282_v16 = vmax.f32 %v1280_v15, 0.0 }
0x11da   : > { %1509 = vmatpush.msrb.mxu1 %v1486_v14 }
0x11db   : > { %1721 = vmatmul.msk.f32.vlgmr.msra.gmra.mxu2 %vm829_vm14, %v1282_v16 }
0x125e   : > { %v1304_v18 = vpop.f32.mrf.mxu2 }
0x125f   : > { %v1305_v20 = vadd.f32 %v1824_v17, %v1304_v18 }
0x1261   : > { %v1307_v22 = vadd.f32 %v1305_v20, %v1257_v8 }
0x1263   : > { %v1308_v23 = vsel %vm306_vm0, %v1307_v22, 0.0 }
0x1264   : > { %1309 = vadd.xlane.f32.xlu2 %v1308_v23 }
0x12d7   : > { %v1310_v24 = vpop.xlane.xlu2 %1309 }
0x12d8   : > { %v1311_v25 = vmul.f32 %v1310_v24, %v2113_v21 }
0x12da   : > { %v1312_v26 = vsub.f32 %v1307_v22, %v1311_v25 }
0x12dc   : > { %v1313_v27 = vmul.f32 %v1312_v26, %v1312_v26 }
0x12de   : > { %v1314_v28 = vsel %vm306_vm0, %v1313_v27, 0.0 }
0x12df   : > { %1315 = vadd.xlane.f32.xlu0 %v1314_v28 }
0x1352   : > { %v1316_v37 = vpop.xlane.xlu0 %1315 }
0x1353   : > { %v1317_v10 = vmul.f32 %v1316_v37, %v2113_v21 }
0x1355   : > { %v1318_v39 = vadd.f32 1e-05, %v1317_v10 }
0x1357   : > { %1873 = vrsqrt.f32 %v1318_v39  ;;  %vm1325_vm7 = vweird.f32 %v1318_v39 }
0x135d   : > { %v1874_v41 = vpop.eup %1873 }
0x135e   : > { %v1320_v42 = vmul.f32 %v1874_v41, %v1318_v39  ;;  %vm1326_vm6 = vweird.f32 %v1874_v41 }
0x135f   : > { %vm1327_vm8 = vmor %vm1325_vm7, %vm1326_vm6 }
0x1360   : > { %v1321_v43 = vmul.f32 %v1874_v41, %v1320_v42 }
0x1362   : > { %v1322_v44 = vmul.f32 0.5, %v1321_v43  ;;  %v1398_v43 = vld [vmem:[%s2443_s4 + $0x22] sm:$0x1] }
0x1364   : > { %v1323_v45 = vsub.f32 1.5, %v1322_v44 }
0x1366   : > { %v1324_v46 = vmul.f32 %v1874_v41, %v1323_v45 }
0x1368   : > { %v1328_v48 = vsel %vm1327_vm8, %v1874_v41, %v1324_v46 }
0x1369   : > { %v1329_v49 = vmul.f32 %v1328_v48, %v1312_v26  ;;  %v1459_v26 = vld [vmem:[%s2443_s4 + $0x25] sm:$0x1] }
0x136b   : > { %v1331_v51 = vmul.f32 %v1825_v47, %v1329_v49 }
0x136d   : > { %v2346_v52 = vadd.f32 %v1826_v50, %v1331_v51 }
0x136f   : > { %1722 = vmatmul.msk.f32.vlgmr.msra.gmra.mxu0 %vm306_vm0, %v2346_v52 }
0x1377   : > { %1726 = vmatmul.msk.f32.vlgmr.msrb.gmra.mxu0 %vm306_vm0, %v2346_v52 }
0x13ec   : > { %v1360_v56 = vpop.f32.mrf.mxu0 }
0x13ed   : > { %v1361_v57 = vadd.f32 %v1827_v55, %v1360_v56  ;;  %v1541_v56 = vld [vmem:[%s2443_s4 + $0x2a] sm:$0x1] }
0x13ef   : > { %vm1363_vm9 = vcmp.ge.f32.partialorder %v1361_v57, 0.0  ;;  %v1364_v58 = vmul.f32 0.01, %v1361_v57 }
0x13f1   : > { %v1365_v59 = vsel %vm1363_vm9, %v1361_v57, %v1364_v58 }
0x13f2   : > { %1723 = vmatmul.msk.f32.vlgmr.msra.gmra.mxu1 %vm306_vm0, %v1365_v59 }
0x13f4   : > { %v1455_v61 = vpop.f32.mrf.mxu0 }
0x13f5   : > { %v1456_v62 = vadd.f32 %v1455_v61, %v1437_v60  ;;  %v1399_v60 = vld [vmem:[%s2443_s4 + $0x23] sm:$0x1]  ;;  %v1546_v61 = vld [vmem:[%s2443_s4 + $0x2b] sm:$0x1] }
0x13f7   : > { %v1458_v63 = vmax.f32 %v1456_v62, 0.0 }
0x13f9   : > { %v1462_v0 = vsel %vm1461_vm10, %v1458_v63, 0.0 }
0x13fa   : > { %1463 = vadd.xlane.f32.xlu1 %v1462_v0 }
0x146d   : > { %v1464_v2 = vpop.xlane.xlu1 %1463 }
0x146e   : > { %v1465_v3 = vmul.f32 %v1464_v2, %v2113_v21 }
0x146f   : > { %v1392_v4 = vpop.f32.mrf.mxu1 }
0x1470   : > { %v1466_v5 = vsub.f32 %v1458_v63, %v1465_v3  ;;  %v1393_v6 = vadd.f32 %v1828_v1, %v1392_v4 }
0x1472   : > { %vm1395_vm11 = vcmp.ge.f32.partialorder %v1393_v6, 0.0  ;;  %v1396_v7 = vmul.f32 0.01, %v1393_v6  ;;  %v1467_v19 = vmul.f32 %v1466_v5, %v1466_v5 }
0x1474   : > { %v1397_v8 = vsel %vm1395_vm11, %v1393_v6, %v1396_v7  ;;  %v1468_v9 = vsel %vm1461_vm10, %v1467_v19, 0.0 }
0x1475   : > { %1469 = vadd.xlane.f32.xlu2 %v1468_v9  ;;  %1724 = vmatpush.xpose.msk.msra.mxu3 %vm306_vm0, %v1397_v8 }
0x1478   : > { %1725 = vmatmul.msk.f32.vlgmr.msra.gmra.mxu3 %vm306_vm0, %v1398_v43 }
0x148d   : > { %1402 = vperm.xlu2 %1800, %v1399_v60  }
0x14e8   : > { %v1470_v15 = vpop.xlane.xlu2 %1469 }
0x14e9   : > { %v1471_v16 = vmul.f32 %v1470_v15, %v2113_v21 }
0x14eb   : > { %v1472_v17 = vadd.f32 1e-05, %v1471_v16 }
0x14ed   : > { %1875 = vrsqrt.f32 %v1472_v17  ;;  %vm1479_vm13 = vweird.f32 %v1472_v17 }
0x14f0   : > { %v1403_v0 = vpop.permute.xlu2 %1402 }
0x14f3   : > { %v1876_v18 = vpop.eup %1875 }
0x14f4   : > { %v1474_v20 = vmul.f32 %v1876_v18, %v1472_v17  ;;  %vm1480_vm12 = vweird.f32 %v1876_v18 }
0x14f5   : > { %vm1481_vm14 = vmor %vm1479_vm13, %vm1480_vm12 }
0x14f6   : > { %v1475_v22 = vmul.f32 %v1876_v18, %v1474_v20 }
0x14f8   : > { %v1476_v23 = vmul.f32 0.5, %v1475_v22 }
0x14fa   : > { %v1477_v24 = vsub.f32 1.5, %v1476_v23 }
0x14fb   : > { %v1428_v1 = vpop.f32.mrf.mxu3 }
0x14fc   : > { %v1478_v25 = vmul.f32 %v1876_v18, %v1477_v24  ;;  %v1429_v2 = vadd.f32 %v1428_v1, %v1403_v0 }
0x14fe   : > { %v1482_v27 = vsel %vm1481_vm14, %v1876_v18, %v1478_v25  ;;  %1432 = vst.msk [vmem:[%s283_s29] sm:$0x1] %vm1431_vm3, %v1429_v2 }
0x14ff   : > { %v1483_v28 = vmul.f32 %v1482_v27, %v1466_v5 }
0x1501   : > { %v1484_v30 = vmul.f32 %v1483_v28, %v1459_v26 }
0x1503   : > { %v1485_v32 = vadd.f32 %v1484_v30, %v1460_v29 }
0x1505   : > { %1727 = vmatmul.msk.f32.vlgmr.msrb.gmra.mxu1 %vm306_vm0, %v1485_v32 }
0x1582   : > { %v1511_v34 = vpop.f32.mrf.mxu1 }
0x1583   : > { %v1512_v35 = vadd.f32 %v1511_v34, %v1490_v33 }
0x1585   : > { %v1514_v36 = vmax.f32 %v1512_v35, 0.0 }
0x1587   : > { %v1517_v37 = vsel %vm1461_vm10, %v1514_v36, 0.0 }
0x1588   : > { %1518 = vadd.xlane.f32.xlu0 %v1517_v37 }
0x15fb   : > { %v1519_v10 = vpop.xlane.xlu0 %1518 }
0x15fc   : > { %v1520_v38 = vmul.f32 %v1519_v10, %v2113_v21 }
0x15fe   : > { %v1521_v39 = vsub.f32 %v1514_v36, %v1520_v38 }
0x1600   : > { %v1522_v40 = vmul.f32 %v1521_v39, %v1521_v39 }
0x1602   : > { %v1523_v41 = vsel %vm1461_vm10, %v1522_v40, 0.0 }
0x1603   : > { %1524 = vadd.xlane.f32.xlu1 %v1523_v41 }
0x1676   : > { %v1525_v42 = vpop.xlane.xlu1 %1524 }
0x1677   : > { %v1526_v44 = vmul.f32 %v1525_v42, %v2113_v21 }
0x1679   : > { %v1527_v45 = vadd.f32 1e-05, %v1526_v44 }
0x167b   : > { %1877 = vrsqrt.f32 %v1527_v45  ;;  %vm1534_vm1 = vweird.f32 %v1527_v45 }
0x1681   : > { %v1878_v46 = vpop.eup %1877 }
0x1682   : > { %v1529_v47 = vmul.f32 %v1878_v46, %v1527_v45  ;;  %vm1535_vm15 = vweird.f32 %v1878_v46 }
0x1683   : > { %vm1536_vm2 = vmor %vm1534_vm1, %vm1535_vm15 }
0x1684   : > { %v1530_v48 = vmul.f32 %v1878_v46, %v1529_v47 }
0x1686   : > { %v1531_v49 = vmul.f32 0.5, %v1530_v48 }
0x1688   : > { %v1532_v50 = vsub.f32 1.5, %v1531_v49 }
0x168a   : > { %v1533_v51 = vmul.f32 %v1878_v46, %v1532_v50 }
0x168c   : > { %v1537_v53 = vsel %vm1536_vm2, %v1878_v46, %v1533_v51 }
0x168d   : > { %v1538_v21 = vmul.f32 %v1537_v53, %v1521_v39 }
0x168f   : > { %v1539_v55 = vmul.f32 %v1538_v21, %v1515_v54 }
0x1691   : > { %v1540_v57 = vadd.f32 %v1539_v55, %v1516_v31 }
0x1693   : > { %v1542_v58 = vmul.f32 %v1541_v56, %v1540_v57 }
0x1695   : > { %v1543_v59 = vsel %vm1461_vm10, %v1542_v58, 0.0 }
0x1696   : > { %1544 = vadd.xlane.f32.xlu0 %v1543_v59 }
0x1709   : > { %v1545_v62 = vpop.xlane.xlu0 %1544 }
0x170a   : > { %v1547_v63 = vadd.f32 %v1546_v61, %v1545_v62 }
0x170c   : > { %1549 = vrot.lane.b32.xlu1 %v1547_v63, %s1996_s28 }
0x170d   : > { %1936 = shalt.err (!%p1933_p8)
}
0x170e   : > { %1734 = dma.vmem_to_hbm [thread:$0]  (%p2070_p5), %s1570_s15, 16, %s1572_s17, %s1556_s13   ;;  %vm1553_vm4 = vcmask 262144  }
0x170f   : > { %s302_s11 = scalar_lea.vmem %s2445_s6, %s2092_s16 }
0x177e   : > { %v1550_v3 = vpop.permute.xlu1 %1549 }
0x177f   : > { %v1552_v4 = vsel %vm306_vm0, %v2346_v52, %v1550_v3 }
0x1780   : > { %1554 = vst.msk [vmem:[%s302_s11] sm:$0x1] %vm1553_vm4, %v1552_v4 }
0x1781 PF: > { %p1746_p9 = scmp.ge.s32.totalorder %s1975_s24, 2  ;;  %s1586_s14 = sand.u32 1, %s1963_s21  }
0x1782   : > { %s1587_s7 = scalar_lea.sflag [#allocation4], %s1586_s14 }
0x1783   : > { %p1741_p10 = pnand %p1746_p9, %p2074_p6 }
0x1785   : > { %p1742_p11 = pneg %p1741_p10 }
0x1787   : > { %1958 = dma.done.wait (%p1742_p11), %s1587_s7, 16  }
0x1788   : > { %1960 = vsyncadd (%p1742_p11), %s1587_s7, 4294967280  ;;  %p18_p5 = scmp.ge.s32.totalorder %s2057_s27, 4   ;;  %s2460_s21 = smov %s1967_s22 }
0x1789   : > { %s2461_s22 = smov %s1971_s23  ;;  %s2462_s23 = smov %s2068_s30 }
0x178a   : > { %s2463_s24 = smov %s2057_s27  ;;  %20 = sbr.rel (!%p18_p5) target bundleno = 4 (0x4), region = 98 }
0x178f   :  { %1598 = vsyncpa [#allocation3], 1 }
0x1790   :  { %1600 = vsyncpa [#allocation3 + $0x1], 1 }
0x1791   :  { %1601 = vsyncpa [#allocation4], 1 }
0x1792   :  { %1603 = vsyncpa [#allocation4 + $0x1], 1 }

</bundles_post_ra>
